<compile_context>
chip_gen: v7x
topology: tpu7x:2x2x1
jax: 0.10.0
libtpu: 0.0.40
codegen_flags: <defaults>
</compile_context>

<pallas_src>
import jax
import jax.numpy as jnp
from jax import lax
from jax.experimental import pallas as pl
from jax.experimental.pallas import tpu as pltpu


# ------------------------------ fused kernel --------------------------------

def _make_bottleneck_kernel(stride, H, W, OH, OW, P, has_proj):
    """One grid step == one whole image.  No strided / gathered ref indexing."""
    has_xsc = stride != 1              # separate pre-subsampled shortcut input
    if stride == 1:
        HB, WB = H + 2, W + 2          # plain zero-padded image
        row_off = (0, 1, 2)            # tap start row/col for ky / kx = 0, 1, 2
        col_off = (0, 1, 2)
    else:                              # stride == 2: x arrives row/col-permuted
        HB, WB = H + 1, W + 1          # [pad | even-padded | odd-padded] layout
        row_off = (0, OH + 1, 1)
        col_off = (0, OW + 1, 1)
    M = OH * OW

    def kernel(*refs):
        i = 0
        x_ref = refs[i]; i += 1                       # (1, H*W, Cin) bf16
        xsc_ref = None
        if has_xsc:
            xsc_ref = refs[i]; i += 1                 # (1, OH*OW, Cin) bf16
        (w1_ref, s1_ref, b1_ref, w2_ref, s2_ref, b2_ref,
         w3_ref, s3_ref, b3_ref) = refs[i:i + 9]; i += 9
        if has_proj:
            ws_ref, ss_ref, bs_ref = refs[i:i + 3]; i += 3
        o_ref, o1 = refs[i], refs[i + 1]              # out block, VMEM scratch

        # ---- stage 1: out1 = relu(bn1(conv1(x))), one dot for the whole image --
        xv = x_ref[0]                                                # (H*W, Cin)
        y = jnp.dot(xv, w1_ref[...], preferred_element_type=jnp.float32)
        y = jnp.maximum(y * s1_ref[...] + b1_ref[...], 0.0)          # (H*W, P)
        o1[pl.ds(1, H), pl.ds(1, W), :] = y.reshape(H, W, P)
        # zero borders of the scratch == conv2's spatial zero padding
        zrow = jnp.zeros((1, WB, P), jnp.float32)
        zcol = jnp.zeros((HB, 1, P), jnp.float32)
        o1[pl.ds(0, 1), :, :] = zrow
        o1[:, pl.ds(0, 1), :] = zcol
        if stride == 1:
            o1[pl.ds(H + 1, 1), :, :] = zrow
            o1[:, pl.ds(W + 1, 1), :] = zcol

        # ---- conv2 (3x3, stride) as 3 per-ky dots with K = 3P, then bn2+relu ---
        acc = None
        for ky in range(3):
            taps = [o1[pl.ds(row_off[ky], OH), pl.ds(col_off[kx], OW), :]
                    for kx in range(3)]                              # (OH, OW, P)
            lhs = jnp.concatenate(taps, axis=-1).reshape(M, 3 * P)
            d = jnp.dot(lhs.astype(jnp.bfloat16), w2_ref[ky],
                        preferred_element_type=jnp.float32)
            acc = d if acc is None else acc + d
        h = jnp.maximum(acc * s2_ref[...] + b2_ref[...], 0.0)        # (M, P)

        # ---- conv3 (1x1) + bn3 --------------------------------------------------
        out = jnp.dot(h.astype(jnp.bfloat16), w3_ref[...],
                      preferred_element_type=jnp.float32)
        out = out * s3_ref[...] + b3_ref[...]                        # (M, Cout)

        # ---- shortcut: identity, or 1x1 projection + bn --------------------------
        xs = xsc_ref[0] if has_xsc else xv                           # (M, Cin)
        if has_proj:
            sc = jnp.dot(xs, ws_ref[...], preferred_element_type=jnp.float32)
            sc = sc * ss_ref[...] + bs_ref[...]
        else:
            sc = xs.astype(jnp.float32)                              # no matmul

        o_ref[0] = jnp.maximum(out + sc, 0.0)

    return kernel


# -------------------------------- wrapper ------------------------------------

def bottleneck_forward(x_nhwc, params, stride):
    (w1, s1, b1, w2, s2, b2, w3, s3, b3, ws, ss, bs) = params
    N, H, W, Cin = x_nhwc.shape
    P = w1.shape[1]
    Cout = w3.shape[1]
    has_proj = ws is not None
    assert stride in (1, 2), "ResNet Bottleneck uses stride 1 or 2"
    if stride == 2:
        assert H % 2 == 0 and W % 2 == 0, "stride-2 blocks need even H, W"
    OH = (H - 1) // stride + 1
    OW = (W - 1) // stride + 1
    M = OH * OW
    HB, WB = (H + 2, W + 2) if stride == 1 else (H + 1, W + 1)

    bf = jnp.bfloat16

    # Activations: bf16, and (for stride 2) spatially re-ordered so that every
    # 3x3/stride-2 tap becomes a contiguous slice inside the kernel.
    if stride == 2:
        ridx = jnp.asarray(list(range(1, H, 2)) + list(range(0, H, 2)), jnp.int32)
        cidx = jnp.asarray(list(range(1, W, 2)) + list(range(0, W, 2)), jnp.int32)
        xp = jnp.take(jnp.take(x_nhwc, ridx, axis=1), cidx, axis=2)
        x_sc = x_nhwc[:, ::2, ::2, :]            # shortcut reads x[::2, ::2]
    else:
        xp, x_sc = x_nhwc, None                  # no jnp.pad of the full tensor
    x_flat = xp.astype(bf).reshape(N, H * W, Cin)

    # Constants: bf16 matmul weights, f32 folded-BN scale/bias.
    w1b = w1.astype(bf)
    w2b = w2.reshape(3, 3 * P, P).astype(bf)     # [ky, kx*P + cin, cout]
    w3b = w3.astype(bf)

    def cspec(shape):
        nd = len(shape)

        def imap(n):
            return (0,) * nd

        return pl.BlockSpec(shape, imap)

    in_specs = [pl.BlockSpec((1, H * W, Cin), lambda n: (n, 0, 0))]
    args = [x_flat]
    if stride != 1:
        in_specs.append(pl.BlockSpec((1, M, Cin), lambda n: (n, 0, 0)))
        args.append(x_sc.astype(bf).reshape(N, M, Cin))
    in_specs += [cspec((Cin, P)), cspec((1, P)), cspec((1, P)),
                 cspec((3, 3 * P, P)), cspec((1, P)), cspec((1, P)),
                 cspec((P, Cout)), cspec((1, Cout)), cspec((1, Cout))]
    args += [w1b, s1, b1, w2b, s2, b2, w3b, s3, b3]
    if has_proj:
        in_specs += [cspec((Cin, Cout)), cspec((1, Cout)), cspec((1, Cout))]
        args += [ws.astype(bf), ss, bs]

    flops = 2 * N * (H * W * Cin * P            # conv1 (once per pixel)
                     + M * 9 * P * P            # conv2
                     + M * P * Cout             # conv3
                     + (M * Cin * Cout if has_proj else 0))
    bytes_accessed = (N * H * W * Cin * 2
                      + (N * M * Cin * 2 if stride != 1 else 0)
                      + (int(w1b.size) + int(w2b.size) + int(w3b.size)) * 2
                      + (Cin * Cout * 2 if has_proj else 0)
                      + N * M * Cout * 4)

    kernel = _make_bottleneck_kernel(stride, H, W, OH, OW, P, has_proj)
    out = pl.pallas_call(
        kernel,
        out_shape=jax.ShapeDtypeStruct((N, M, Cout), jnp.float32),
        grid=(N,),
        in_specs=in_specs,
        out_specs=pl.BlockSpec((1, M, Cout), lambda n: (n, 0, 0)),
        scratch_shapes=[pltpu.VMEM((HB, WB, P), jnp.float32)],
        compiler_params=pltpu.CompilerParams(
            dimension_semantics=("parallel",)),
        cost_estimate=pl.CostEstimate(flops=int(flops), transcendentals=0,
                                      bytes_accessed=int(bytes_accessed)),
    )(*args)
    return out.reshape(N, OH, OW, Cout)


# --------------------------- parameter setup ---------------------------------

def init_bottleneck_params(key, in_planes, planes, stride, expansion=4, eps=1e-5):
    Cout = expansion * planes
    ks = jax.random.split(key, 6)
    kconv = jax.random.split(ks[0], 4)

    def bn(k, c):
        kg, kb, km, kv = jax.random.split(k, 4)
        gamma = 1.0 + 0.1 * jax.random.normal(kg, (c,), jnp.float32)
        beta = 0.1 * jax.random.normal(kb, (c,), jnp.float32)
        mean = 0.1 * jax.random.normal(km, (c,), jnp.float32)
        var = jax.random.uniform(kv, (c,), jnp.float32, 0.5, 1.5)
        scale = gamma / jnp.sqrt(var + eps)
        bias = beta - mean * scale
        return scale.reshape(1, c), bias.reshape(1, c)

    w1 = jax.random.normal(kconv[0], (in_planes, planes), jnp.float32) / jnp.sqrt(in_planes)
    w2 = jax.random.normal(kconv[1], (3, 3, planes, planes), jnp.float32) / jnp.sqrt(9.0 * planes)
    w3 = jax.random.normal(kconv[2], (planes, Cout), jnp.float32) / jnp.sqrt(planes)
    s1, b1 = bn(ks[1], planes)
    s2, b2 = bn(ks[2], planes)
    s3, b3 = bn(ks[3], Cout)

    if (stride != 1) or (in_planes != Cout):
        ws = jax.random.normal(kconv[3], (in_planes, Cout), jnp.float32) / jnp.sqrt(in_planes)
        ss, bs = bn(ks[4], Cout)
    else:
        ws = ss = bs = None     # identity shortcut: handled in-kernel w/o matmul
    return (w1, s1, b1, w2, s2, b2, w3, s3, b3, ws, ss, bs)


# --------------------------- pure-JAX reference -------------------------------

def bottleneck_reference(x_nhwc, params, stride):
    (w1, s1, b1, w2, s2, b2, w3, s3, b3, ws, ss, bs) = params
    Cin = x_nhwc.shape[-1]
    P = w1.shape[1]
    Cout = w3.shape[1]

    def conv(x, w, st, pad):
        return lax.conv_general_dilated(
            x, w, window_strides=(st, st), padding=pad,
            dimension_numbers=("NHWC", "HWIO", "NHWC"))

    o = jnp.maximum(conv(x_nhwc, w1.reshape(1, 1, Cin, P), 1, "VALID") * s1 + b1, 0.0)
    o = jnp.maximum(conv(o, w2, stride, ((1, 1), (1, 1))) * s2 + b2, 0.0)
    o = conv(o, w3.reshape(1, 1, P, Cout), 1, "VALID") * s3 + b3
    if ws is not None:
        sc = conv(x_nhwc, ws.reshape(1, 1, Cin, Cout), stride, "VALID") * ss + bs
    else:
        sc = x_nhwc
    return jnp.maximum(o + sc, 0.0)


# ----------------------------------- main -------------------------------------

if __name__ == "__main__":
    key = jax.random.PRNGKey(0)

    def q(a):
        # Kernel uses bf16 activations / matmul operands; quantize the reference's
        # weights & input the same way so the check isolates kernel correctness.
        return a.astype(jnp.bfloat16).astype(jnp.float32)

    cases = [
        # (N, H, W, in_planes, planes, stride)
        (2, 16, 16, 8, 4, 2),    # projection shortcut, stride 2
        (2, 16, 16, 8, 4, 1),    # projection shortcut, stride 1
        (2, 16, 16, 16, 4, 1),   # identity shortcut (no shortcut matmul)
    ]
    for (N, H, W, in_planes, planes, stride) in cases:
        key, kx, kp = jax.random.split(key, 3)
        x = q(jax.random.normal(kx, (N, H, W, in_planes), jnp.float32))
        (w1, s1, b1, w2, s2, b2, w3, s3, b3, ws, ss, bs) = \
            init_bottleneck_params(kp, in_planes, planes, stride)
        params = (q(w1), s1, b1, q(w2), s2, b2, q(w3), s3, b3,
                  None if ws is None else q(ws), ss, bs)

        out = jax.block_until_ready(bottleneck_forward(x, params, stride))
        ref = jax.block_until_ready(bottleneck_reference(x, params, stride))

        OH = (H - 1) // stride + 1
        assert out.shape == (N, OH, OH, 4 * planes), out.shape
        err = float(jnp.max(jnp.abs(out - ref)))
        assert jnp.allclose(out, ref, rtol=2e-2, atol=2e-2), err

    print("KERNEL_OK")
</pallas_src>

<mosaic_0001>
module attributes {stable_mosaic.version = 11 : i64} {
  func.func @kernel(%arg0: i32, %arg1: memref<1x256x8xbf16, #tpu.memory_space<vmem>>, %arg2: memref<1x64x8xbf16, #tpu.memory_space<vmem>>, %arg3: memref<8x4xbf16, #tpu.memory_space<vmem>>, %arg4: memref<1x4xf32, #tpu.memory_space<vmem>>, %arg5: memref<1x4xf32, #tpu.memory_space<vmem>>, %arg6: memref<3x12x4xbf16, #tpu.memory_space<vmem>>, %arg7: memref<1x4xf32, #tpu.memory_space<vmem>>, %arg8: memref<1x4xf32, #tpu.memory_space<vmem>>, %arg9: memref<4x16xbf16, #tpu.memory_space<vmem>>, %arg10: memref<1x16xf32, #tpu.memory_space<vmem>>, %arg11: memref<1x16xf32, #tpu.memory_space<vmem>>, %arg12: memref<8x16xbf16, #tpu.memory_space<vmem>>, %arg13: memref<1x16xf32, #tpu.memory_space<vmem>>, %arg14: memref<1x16xf32, #tpu.memory_space<vmem>>, %arg15: memref<1x64x16xf32, #tpu.memory_space<vmem>>, %arg16: memref<17x17x4xf32, #tpu.memory_space<vmem>>) attributes {dimension_semantics = [#tpu.dimension_semantics<parallel>], iteration_bounds = array<i64: 2>, scalar_prefetch = 0 : i64, scratch_operands = 1 : i64, tpu.core_type = #tpu.core_type<tc>, window_params = [{transform_indices = @transform_0, window_bounds = array<i64: 1, 256, 8>}, {transform_indices = @transform_1, window_bounds = array<i64: 1, 64, 8>}, {pipeline_mode = #tpu.pipeline_mode<synchronous>, transform_indices = @transform_2, window_bounds = array<i64: 8, 4>}, {pipeline_mode = #tpu.pipeline_mode<synchronous>, transform_indices = @transform_3, window_bounds = array<i64: 1, 4>}, {pipeline_mode = #tpu.pipeline_mode<synchronous>, transform_indices = @transform_4, window_bounds = array<i64: 1, 4>}, {pipeline_mode = #tpu.pipeline_mode<synchronous>, transform_indices = @transform_5, window_bounds = array<i64: 3, 12, 4>}, {pipeline_mode = #tpu.pipeline_mode<synchronous>, transform_indices = @transform_6, window_bounds = array<i64: 1, 4>}, {pipeline_mode = #tpu.pipeline_mode<synchronous>, transform_indices = @transform_7, window_bounds = array<i64: 1, 4>}, {pipeline_mode = #tpu.pipeline_mode<synchronous>, transform_indices = @transform_8, window_bounds = array<i64: 4, 16>}, {pipeline_mode = #tpu.pipeline_mode<synchronous>, transform_indices = @transform_9, window_bounds = array<i64: 1, 16>}, {pipeline_mode = #tpu.pipeline_mode<synchronous>, transform_indices = @transform_10, window_bounds = array<i64: 1, 16>}, {pipeline_mode = #tpu.pipeline_mode<synchronous>, transform_indices = @transform_11, window_bounds = array<i64: 8, 16>}, {pipeline_mode = #tpu.pipeline_mode<synchronous>, transform_indices = @transform_12, window_bounds = array<i64: 1, 16>}, {pipeline_mode = #tpu.pipeline_mode<synchronous>, transform_indices = @transform_13, window_bounds = array<i64: 1, 16>}, {transform_indices = @transform_14, window_bounds = array<i64: 1, 64, 16>}]} {
    %c0 = arith.constant 0 : index
    %c0_0 = arith.constant 0 : index
    %c0_1 = arith.constant 0 : index
    %0 = vector.load %arg1[%c0, %c0_0, %c0_1] : memref<1x256x8xbf16, #tpu.memory_space<vmem>>, vector<1x256x8xbf16>
    %1 = vector.shape_cast %0 : vector<1x256x8xbf16> to vector<256x8xbf16>
    %c0_2 = arith.constant 0 : index
    %c0_3 = arith.constant 0 : index
    %2 = vector.load %arg3[%c0_2, %c0_3] : memref<8x4xbf16, #tpu.memory_space<vmem>>, vector<8x4xbf16>
    %cst = arith.constant dense<0.000000e+00> : vector<256x4xf32>
    %3 = tpu.matmul %1, %2, %cst {dimension_numbers = #tpu.dot_dimension_numbers<[1], [0], [0], [1], [0, 0, 1, 1], [], []>} : vector<256x8xbf16>, vector<8x4xbf16>, vector<256x4xf32> -> vector<256x4xf32>
    %c0_4 = arith.constant 0 : index
    %c0_5 = arith.constant 0 : index
    %4 = vector.load %arg4[%c0_4, %c0_5] : memref<1x4xf32, #tpu.memory_space<vmem>>, vector<1x4xf32>
    %5 = vector.broadcast %4 : vector<1x4xf32> to vector<256x4xf32>
    %6 = arith.mulf %3, %5 : vector<256x4xf32>
    %c0_6 = arith.constant 0 : index
    %c0_7 = arith.constant 0 : index
    %7 = vector.load %arg5[%c0_6, %c0_7] : memref<1x4xf32, #tpu.memory_space<vmem>>, vector<1x4xf32>
    %8 = vector.broadcast %7 : vector<1x4xf32> to vector<256x4xf32>
    %9 = arith.addf %6, %8 : vector<256x4xf32>
    %cst_8 = arith.constant 0.000000e+00 : f32
    %10 = vector.broadcast %cst_8 : f32 to vector<256x4xf32>
    %11 = arith.maximumf %9, %10 : vector<256x4xf32>
    %12 = vector.shape_cast %11 : vector<256x4xf32> to vector<16x16x4xf32>
    %c1 = arith.constant 1 : index
    %c1_9 = arith.constant 1 : index
    %c0_10 = arith.constant 0 : index
    %13 = vector.load %arg16[%c1, %c1_9, %c0_10] : memref<17x17x4xf32, #tpu.memory_space<vmem>>, vector<16x16x4xf32>
    tpu.vector_store %arg16[%c1, %c1_9, %c0_10], %12 {strides = array<i32>} : memref<17x17x4xf32, #tpu.memory_space<vmem>>, vector<16x16x4xf32>,
    %cst_11 = arith.constant 0.000000e+00 : f32
    %14 = vector.broadcast %cst_11 : f32 to vector<1x17x4xf32>
    %cst_12 = arith.constant 0.000000e+00 : f32
    %15 = vector.broadcast %cst_12 : f32 to vector<17x1x4xf32>
    %c0_13 = arith.constant 0 : index
    %c0_14 = arith.constant 0 : index
    %c0_15 = arith.constant 0 : index
    %16 = vector.load %arg16[%c0_13, %c0_14, %c0_15] : memref<17x17x4xf32, #tpu.memory_space<vmem>>, vector<1x17x4xf32>
    tpu.vector_store %arg16[%c0_13, %c0_14, %c0_15], %14 {strides = array<i32>} : memref<17x17x4xf32, #tpu.memory_space<vmem>>, vector<1x17x4xf32>,
    %c0_16 = arith.constant 0 : index
    %c0_17 = arith.constant 0 : index
    %c0_18 = arith.constant 0 : index
    %17 = vector.load %arg16[%c0_16, %c0_17, %c0_18] : memref<17x17x4xf32, #tpu.memory_space<vmem>>, vector<17x1x4xf32>
    tpu.vector_store %arg16[%c0_16, %c0_17, %c0_18], %15 {strides = array<i32>} : memref<17x17x4xf32, #tpu.memory_space<vmem>>, vector<17x1x4xf32>,
    %c0_19 = arith.constant 0 : index
    %c0_20 = arith.constant 0 : index
    %c0_21 = arith.constant 0 : index
    %18 = vector.load %arg16[%c0_19, %c0_20, %c0_21] : memref<17x17x4xf32, #tpu.memory_space<vmem>>, vector<8x8x4xf32>
    %c0_22 = arith.constant 0 : index
    %c9 = arith.constant 9 : index
    %c0_23 = arith.constant 0 : index
    %19 = vector.load %arg16[%c0_22, %c9, %c0_23] : memref<17x17x4xf32, #tpu.memory_space<vmem>>, vector<8x8x4xf32>
    %c0_24 = arith.constant 0 : index
    %c1_25 = arith.constant 1 : index
    %c0_26 = arith.constant 0 : index
    %20 = vector.load %arg16[%c0_24, %c1_25, %c0_26] : memref<17x17x4xf32, #tpu.memory_space<vmem>>, vector<8x8x4xf32>
    %21 = tpu.concatenate %18, %19, %20 in 2 : vector<8x8x4xf32>, vector<8x8x4xf32>, vector<8x8x4xf32> -> vector<8x8x12xf32>
    %22 = vector.shape_cast %21 : vector<8x8x12xf32> to vector<64x12xf32>
    %23 = arith.truncf %22 : vector<64x12xf32> to vector<64x12xbf16>
    %c0_27 = arith.constant 0 : index
    %c0_28 = arith.constant 0 : index
    %c0_29 = arith.constant 0 : index
    %24 = vector.load %arg6[%c0_27, %c0_28, %c0_29] : memref<3x12x4xbf16, #tpu.memory_space<vmem>>, vector<1x12x4xbf16>
    %25 = vector.shape_cast %24 : vector<1x12x4xbf16> to vector<12x4xbf16>
    %cst_30 = arith.constant dense<0.000000e+00> : vector<64x4xf32>
    %26 = tpu.matmul %23, %25, %cst_30 {dimension_numbers = #tpu.dot_dimension_numbers<[1], [0], [0], [1], [0, 0, 1, 1], [], []>} : vector<64x12xbf16>, vector<12x4xbf16>, vector<64x4xf32> -> vector<64x4xf32>
    %c9_31 = arith.constant 9 : index
    %c0_32 = arith.constant 0 : index
    %c0_33 = arith.constant 0 : index
    %27 = vector.load %arg16[%c9_31, %c0_32, %c0_33] : memref<17x17x4xf32, #tpu.memory_space<vmem>>, vector<8x8x4xf32>
    %c9_34 = arith.constant 9 : index
    %c9_35 = arith.constant 9 : index
    %c0_36 = arith.constant 0 : index
    %28 = vector.load %arg16[%c9_34, %c9_35, %c0_36] : memref<17x17x4xf32, #tpu.memory_space<vmem>>, vector<8x8x4xf32>
    %c9_37 = arith.constant 9 : index
    %c1_38 = arith.constant 1 : index
    %c0_39 = arith.constant 0 : index
    %29 = vector.load %arg16[%c9_37, %c1_38, %c0_39] : memref<17x17x4xf32, #tpu.memory_space<vmem>>, vector<8x8x4xf32>
    %30 = tpu.concatenate %27, %28, %29 in 2 : vector<8x8x4xf32>, vector<8x8x4xf32>, vector<8x8x4xf32> -> vector<8x8x12xf32>
    %31 = vector.shape_cast %30 : vector<8x8x12xf32> to vector<64x12xf32>
    %32 = arith.truncf %31 : vector<64x12xf32> to vector<64x12xbf16>
    %c1_40 = arith.constant 1 : index
    %c0_41 = arith.constant 0 : index
    %c0_42 = arith.constant 0 : index
    %33 = vector.load %arg6[%c1_40, %c0_41, %c0_42] : memref<3x12x4xbf16, #tpu.memory_space<vmem>>, vector<1x12x4xbf16>
    %34 = vector.shape_cast %33 : vector<1x12x4xbf16> to vector<12x4xbf16>
    %cst_43 = arith.constant dense<0.000000e+00> : vector<64x4xf32>
    %35 = tpu.matmul %32, %34, %cst_43 {dimension_numbers = #tpu.dot_dimension_numbers<[1], [0], [0], [1], [0, 0, 1, 1], [], []>} : vector<64x12xbf16>, vector<12x4xbf16>, vector<64x4xf32> -> vector<64x4xf32>
    %36 = arith.addf %26, %35 : vector<64x4xf32>
    %c1_44 = arith.constant 1 : index
    %c0_45 = arith.constant 0 : index
    %c0_46 = arith.constant 0 : index
    %37 = vector.load %arg16[%c1_44, %c0_45, %c0_46] : memref<17x17x4xf32, #tpu.memory_space<vmem>>, vector<8x8x4xf32>
    %c1_47 = arith.constant 1 : index
    %c9_48 = arith.constant 9 : index
    %c0_49 = arith.constant 0 : index
    %38 = vector.load %arg16[%c1_47, %c9_48, %c0_49] : memref<17x17x4xf32, #tpu.memory_space<vmem>>, vector<8x8x4xf32>
    %c1_50 = arith.constant 1 : index
    %c1_51 = arith.constant 1 : index
    %c0_52 = arith.constant 0 : index
    %39 = vector.load %arg16[%c1_50, %c1_51, %c0_52] : memref<17x17x4xf32, #tpu.memory_space<vmem>>, vector<8x8x4xf32>
    %40 = tpu.concatenate %37, %38, %39 in 2 : vector<8x8x4xf32>, vector<8x8x4xf32>, vector<8x8x4xf32> -> vector<8x8x12xf32>
    %41 = vector.shape_cast %40 : vector<8x8x12xf32> to vector<64x12xf32>
    %42 = arith.truncf %41 : vector<64x12xf32> to vector<64x12xbf16>
    %c2 = arith.constant 2 : index
    %c0_53 = arith.constant 0 : index
    %c0_54 = arith.constant 0 : index
    %43 = vector.load %arg6[%c2, %c0_53, %c0_54] : memref<3x12x4xbf16, #tpu.memory_space<vmem>>, vector<1x12x4xbf16>
    %44 = vector.shape_cast %43 : vector<1x12x4xbf16> to vector<12x4xbf16>
    %cst_55 = arith.constant dense<0.000000e+00> : vector<64x4xf32>
    %45 = tpu.matmul %42, %44, %cst_55 {dimension_numbers = #tpu.dot_dimension_numbers<[1], [0], [0], [1], [0, 0, 1, 1], [], []>} : vector<64x12xbf16>, vector<12x4xbf16>, vector<64x4xf32> -> vector<64x4xf32>
    %46 = arith.addf %36, %45 : vector<64x4xf32>
    %c0_56 = arith.constant 0 : index
    %c0_57 = arith.constant 0 : index
    %47 = vector.load %arg7[%c0_56, %c0_57] : memref<1x4xf32, #tpu.memory_space<vmem>>, vector<1x4xf32>
    %48 = vector.broadcast %47 : vector<1x4xf32> to vector<64x4xf32>
    %49 = arith.mulf %46, %48 : vector<64x4xf32>
    %c0_58 = arith.constant 0 : index
    %c0_59 = arith.constant 0 : index
    %50 = vector.load %arg8[%c0_58, %c0_59] : memref<1x4xf32, #tpu.memory_space<vmem>>, vector<1x4xf32>
    %51 = vector.broadcast %50 : vector<1x4xf32> to vector<64x4xf32>
    %52 = arith.addf %49, %51 : vector<64x4xf32>
    %cst_60 = arith.constant 0.000000e+00 : f32
    %53 = vector.broadcast %cst_60 : f32 to vector<64x4xf32>
    %54 = arith.maximumf %52, %53 : vector<64x4xf32>
    %55 = arith.truncf %54 : vector<64x4xf32> to vector<64x4xbf16>
    %c0_61 = arith.constant 0 : index
    %c0_62 = arith.constant 0 : index
    %56 = vector.load %arg9[%c0_61, %c0_62] : memref<4x16xbf16, #tpu.memory_space<vmem>>, vector<4x16xbf16>
    %cst_63 = arith.constant dense<0.000000e+00> : vector<64x16xf32>
    %57 = tpu.matmul %55, %56, %cst_63 {dimension_numbers = #tpu.dot_dimension_numbers<[1], [0], [0], [1], [0, 0, 1, 1], [], []>} : vector<64x4xbf16>, vector<4x16xbf16>, vector<64x16xf32> -> vector<64x16xf32>
    %c0_64 = arith.constant 0 : index
    %c0_65 = arith.constant 0 : index
    %58 = vector.load %arg10[%c0_64, %c0_65] : memref<1x16xf32, #tpu.memory_space<vmem>>, vector<1x16xf32>
    %59 = vector.broadcast %58 : vector<1x16xf32> to vector<64x16xf32>
    %60 = arith.mulf %57, %59 : vector<64x16xf32>
    %c0_66 = arith.constant 0 : index
    %c0_67 = arith.constant 0 : index
    %61 = vector.load %arg11[%c0_66, %c0_67] : memref<1x16xf32, #tpu.memory_space<vmem>>, vector<1x16xf32>
    %62 = vector.broadcast %61 : vector<1x16xf32> to vector<64x16xf32>
    %63 = arith.addf %60, %62 : vector<64x16xf32>
    %c0_68 = arith.constant 0 : index
    %c0_69 = arith.constant 0 : index
    %c0_70 = arith.constant 0 : index
    %64 = vector.load %arg2[%c0_68, %c0_69, %c0_70] : memref<1x64x8xbf16, #tpu.memory_space<vmem>>, vector<1x64x8xbf16>
    %65 = vector.shape_cast %64 : vector<1x64x8xbf16> to vector<64x8xbf16>
    %c0_71 = arith.constant 0 : index
    %c0_72 = arith.constant 0 : index
    %66 = vector.load %arg12[%c0_71, %c0_72] : memref<8x16xbf16, #tpu.memory_space<vmem>>, vector<8x16xbf16>
    %cst_73 = arith.constant dense<0.000000e+00> : vector<64x16xf32>
    %67 = tpu.matmul %65, %66, %cst_73 {dimension_numbers = #tpu.dot_dimension_numbers<[1], [0], [0], [1], [0, 0, 1, 1], [], []>} : vector<64x8xbf16>, vector<8x16xbf16>, vector<64x16xf32> -> vector<64x16xf32>
    %c0_74 = arith.constant 0 : index
    %c0_75 = arith.constant 0 : index
    %68 = vector.load %arg13[%c0_74, %c0_75] : memref<1x16xf32, #tpu.memory_space<vmem>>, vector<1x16xf32>
    %69 = vector.broadcast %68 : vector<1x16xf32> to vector<64x16xf32>
    %70 = arith.mulf %67, %69 : vector<64x16xf32>
    %c0_76 = arith.constant 0 : index
    %c0_77 = arith.constant 0 : index
    %71 = vector.load %arg14[%c0_76, %c0_77] : memref<1x16xf32, #tpu.memory_space<vmem>>, vector<1x16xf32>
    %72 = vector.broadcast %71 : vector<1x16xf32> to vector<64x16xf32>
    %73 = arith.addf %70, %72 : vector<64x16xf32>
    %74 = arith.addf %63, %73 : vector<64x16xf32>
    %cst_78 = arith.constant 0.000000e+00 : f32
    %75 = vector.broadcast %cst_78 : f32 to vector<64x16xf32>
    %76 = arith.maximumf %74, %75 : vector<64x16xf32>
    %c0_79 = arith.constant 0 : index
    %c0_80 = arith.constant 0 : index
    %c0_81 = arith.constant 0 : index
    %77 = vector.load %arg15[%c0_79, %c0_80, %c0_81] : memref<1x64x16xf32, #tpu.memory_space<vmem>>, vector<1x64x16xf32>
    %78 = vector.shape_cast %77 : vector<1x64x16xf32> to vector<64x16xf32>
    %79 = vector.shape_cast %76 : vector<64x16xf32> to vector<1x64x16xf32>
    tpu.vector_store %arg15[%c0_79, %c0_80, %c0_81], %79 {strides = array<i32>} : memref<1x64x16xf32, #tpu.memory_space<vmem>>, vector<1x64x16xf32>,
    return
  }
  func.func @transform_0(%arg0: i32) -> (i32, i32, i32) {
    %c0_i32 = arith.constant 0 : i32
    %c0_i32_0 = arith.constant 0 : i32
    %c0_i32_1 = arith.constant 0 : i32
    return %arg0, %c0_i32, %c0_i32_0 : i32, i32, i32
  }
  func.func @transform_1(%arg0: i32) -> (i32, i32, i32) {
    %c0_i32 = arith.constant 0 : i32
    %c0_i32_0 = arith.constant 0 : i32
    %c0_i32_1 = arith.constant 0 : i32
    return %arg0, %c0_i32, %c0_i32_0 : i32, i32, i32
  }
  func.func @transform_2(%arg0: i32) -> (i32, i32) {
    %c0_i32 = arith.constant 0 : i32
    %c0_i32_0 = arith.constant 0 : i32
    %c0_i32_1 = arith.constant 0 : i32
    return %c0_i32, %c0_i32_0 : i32, i32
  }
  func.func @transform_3(%arg0: i32) -> (i32, i32) {
    %c0_i32 = arith.constant 0 : i32
    %c0_i32_0 = arith.constant 0 : i32
    %c0_i32_1 = arith.constant 0 : i32
    return %c0_i32, %c0_i32_0 : i32, i32
  }
  func.func @transform_4(%arg0: i32) -> (i32, i32) {
    %c0_i32 = arith.constant 0 : i32
    %c0_i32_0 = arith.constant 0 : i32
    %c0_i32_1 = arith.constant 0 : i32
    return %c0_i32, %c0_i32_0 : i32, i32
  }
  func.func @transform_5(%arg0: i32) -> (i32, i32, i32) {
    %c0_i32 = arith.constant 0 : i32
    %c0_i32_0 = arith.constant 0 : i32
    %c0_i32_1 = arith.constant 0 : i32
    %c0_i32_2 = arith.constant 0 : i32
    return %c0_i32, %c0_i32_0, %c0_i32_1 : i32, i32, i32
  }
  func.func @transform_6(%arg0: i32) -> (i32, i32) {
    %c0_i32 = arith.constant 0 : i32
    %c0_i32_0 = arith.constant 0 : i32
    %c0_i32_1 = arith.constant 0 : i32
    return %c0_i32, %c0_i32_0 : i32, i32
  }
  func.func @transform_7(%arg0: i32) -> (i32, i32) {
    %c0_i32 = arith.constant 0 : i32
    %c0_i32_0 = arith.constant 0 : i32
    %c0_i32_1 = arith.constant 0 : i32
    return %c0_i32, %c0_i32_0 : i32, i32
  }
  func.func @transform_8(%arg0: i32) -> (i32, i32) {
    %c0_i32 = arith.constant 0 : i32
    %c0_i32_0 = arith.constant 0 : i32
    %c0_i32_1 = arith.constant 0 : i32
    return %c0_i32, %c0_i32_0 : i32, i32
  }
  func.func @transform_9(%arg0: i32) -> (i32, i32) {
    %c0_i32 = arith.constant 0 : i32
    %c0_i32_0 = arith.constant 0 : i32
    %c0_i32_1 = arith.constant 0 : i32
    return %c0_i32, %c0_i32_0 : i32, i32
  }
  func.func @transform_10(%arg0: i32) -> (i32, i32) {
    %c0_i32 = arith.constant 0 : i32
    %c0_i32_0 = arith.constant 0 : i32
    %c0_i32_1 = arith.constant 0 : i32
    return %c0_i32, %c0_i32_0 : i32, i32
  }
  func.func @transform_11(%arg0: i32) -> (i32, i32) {
    %c0_i32 = arith.constant 0 : i32
    %c0_i32_0 = arith.constant 0 : i32
    %c0_i32_1 = arith.constant 0 : i32
    return %c0_i32, %c0_i32_0 : i32, i32
  }
  func.func @transform_12(%arg0: i32) -> (i32, i32) {
    %c0_i32 = arith.constant 0 : i32
    %c0_i32_0 = arith.constant 0 : i32
    %c0_i32_1 = arith.constant 0 : i32
    return %c0_i32, %c0_i32_0 : i32, i32
  }
  func.func @transform_13(%arg0: i32) -> (i32, i32) {
    %c0_i32 = arith.constant 0 : i32
    %c0_i32_0 = arith.constant 0 : i32
    %c0_i32_1 = arith.constant 0 : i32
    return %c0_i32, %c0_i32_0 : i32, i32
  }
  func.func @transform_14(%arg0: i32) -> (i32, i32, i32) {
    %c0_i32 = arith.constant 0 : i32
    %c0_i32_0 = arith.constant 0 : i32
    %c0_i32_1 = arith.constant 0 : i32
    return %arg0, %c0_i32, %c0_i32_0 : i32, i32, i32
  }
}

</mosaic_0001>

<bundles_post_ra>
// kernel: tpu_custom_call.1
= control target key start
LH: loop header
LB: loop body
LE: loop exit
PB: predicated region body
PF: predicated region fallthrough
CT: control target
= control target key end

     0   :  { %s2442_s29 = smov 0   ;;  %s2802_s0 = inlined_call_operand.vmem [shape: bf16[2,256,8], index: 0, kind: input, shape index: {}]   ;;  %s2803_s1 = inlined_call_operand.vmem [shape: bf16[2,64,8], index: 1, kind: input, shape index: {}]   ;;  %s2804_s2 = inlined_call_operand.vmem [shape: bf16[8,4], index: 2, kind: input, shape index: {}]   ;;  %s2805_s3 = inlined_call_operand.vmem [shape: f32[1,4], index: 3, kind: input, shape index: {}]   ;;  %s2806_s4 = inlined_call_operand.vmem [shape: f32[1,4], index: 4, kind: input, shape index: {}]   ;;  %s2807_s5 = inlined_call_operand.vmem [shape: bf16[3,12,4], index: 5, kind: input, shape index: {}]   ;;  %s2808_s6 = inlined_call_operand.vmem [shape: f32[1,4], index: 6, kind: input, shape index: {}]   ;;  %s2809_s7 = inlined_call_operand.vmem [shape: f32[1,4], index: 7, kind: input, shape index: {}]   ;;  %s2810_s8 = inlined_call_operand.vmem [shape: bf16[4,16], index: 8, kind: input, shape index: {}]   ;;  %s2811_s9 = inlined_call_operand.vmem [shape: f32[1,16], index: 9, kind: input, shape index: {}]   ;;  %s2812_s10 = inlined_call_operand.vmem [shape: f32[1,16], index: 10, kind: input, shape index: {}]   ;;  %s2813_s11 = inlined_call_operand.vmem [shape: bf16[8,16], index: 11, kind: input, shape index: {}]   ;;  %s2814_s12 = inlined_call_operand.vmem [shape: f32[1,16], index: 12, kind: input, shape index: {}]   ;;  %s2815_s13 = inlined_call_operand.vmem [shape: f32[1,16], index: 13, kind: input, shape index: {}]   ;;  %s2816_s14 = inlined_call_operand.vmem [shape: f32[2,64,16], index: 14, kind: output, shape index: {}]  }
   0x1 LB: > { %s1964_s30 = sadd.s32 4294967295, %s2362_s29   ;;  %p1968_p0 = scmp.ge.s32.totalorder %s2362_s29, 1  ;;  %s2362_s29 = sphi %s2442_s29, %s24_s29  }
   0x2   : > { %p422_p1 = scmp.lt.s32.totalorder %s2362_s29, 3 }
   0x4   : > { %p423_p2 = pnand %p1968_p0, %p422_p1 }
   0x5   : > { %v521_v0 = vld [vmem:[%s2804_s2] sm:$0xf] (!%p423_p2)  ;;  %vm651_vm0 = vcmask (!%p423_p2), 1043456   ;;  %p473_p3 = scmp.lt.s32.totalorder (!%p423_p2), %s1964_s30, 1  ;;  %vm602_vm1 = vcmask (!%p423_p2), 64512   ;;  %vm927_vm2 = vcmask (!%p423_p2), 31744  }
   0x6   : > { %426 = sbr.rel (%p423_p2) target bundleno = 902 (0x386), region = 76  ;;  %2195 = vmatprep.subr.msk.bf16.mxu0 (!%p423_p2), %vm651_vm0, %v521_v0  ;;  %v653_v1 = vsel (!%p423_p2), %vm651_vm0, %v521_v0, 0  ;;  %2196 = vmatprep.subr.msk.bf16.mxu1 (!%p423_p2), %vm651_vm0, %v521_v0  ;;  %vm962_vm3 = vcmask (!%p423_p2), 24576   ;;  %v2364_v18 = vmov (!%p423_p2), 0.0   ;;  %v2519_v19 = vld [vmem:[%s2805_s3] ss:$0 sm:$0xff] (!%p423_p2) }
   0x7   : > { %2094 = vmatpush3.bf16.msra.mxu0 (!%p423_p2), %v653_v1  ;;  %2178 = vmatpush3.bf16.msra.mxu1 (!%p423_p2), %v653_v1  ;;  %961 = vst.msk [vmem:[#allocation2 + $0x8] sm:$0xff] (!%p423_p2), %vm927_vm2, %v2364_v18  ;;  %960 = vst.msk [vmem:[#allocation2] sm:$0xff] (!%p423_p2), %vm927_vm2, %v2364_v18  ;;  %v2524_v21 = vld [vmem:[%s2806_s4] ss:$0 sm:$0xff] (!%p423_p2)  ;;  %vm1221_vm4 = vcmask (!%p423_p2), 1045504   ;;  %s2365_s27 = smov (!%p423_p2), 8  }
   0x8   : > { %963 = vst.msk [vmem:[#allocation2 + $0x10] sm:$0x1] (!%p423_p2), %vm962_vm3, %v2364_v18  ;;  %965 = vst.msk [vmem:[#allocation2 + $0x18] sm:$0x1] (!%p423_p2), %vm962_vm3, %v2364_v18  ;;  %s2366_s28 = smov (!%p423_p2), 4   ;;  %vm1208_vm5 = vcmask (!%p423_p2), 97280  }
   0x9   : > { %966 = vst.msk [vmem:[#allocation2 + $0x30] sm:$0x1] (!%p423_p2), %vm962_vm3, %v2364_v18  ;;  %967 = vst.msk [vmem:[#allocation2 + $0x48] sm:$0x1] (!%p423_p2), %vm962_vm3, %v2364_v18  ;;  %vm1634_vm6 = vcmask (!%p423_p2), 1041408   ;;  %vm1888_vm7 = vcmask (!%p423_p2), 130048  }
   0xa   : > { %968 = vst.msk [vmem:[#allocation2 + $0x60] sm:$0x1] (!%p423_p2), %vm962_vm3, %v2364_v18  ;;  %969 = vst.msk [vmem:[#allocation2 + $0x78] sm:$0x1] (!%p423_p2), %vm962_vm3, %v2364_v18 }
   0xb   : > { %970 = vst.msk [vmem:[#allocation2 + $0x90] sm:$0x1] (!%p423_p2), %vm962_vm3, %v2364_v18  ;;  %971 = vst.msk [vmem:[#allocation2 + $0xa8] sm:$0x1] (!%p423_p2), %vm962_vm3, %v2364_v18 }
   0xc   : > { %972 = vst.msk [vmem:[#allocation2 + $0xc0] sm:$0x1] (!%p423_p2), %vm962_vm3, %v2364_v18  ;;  %973 = vst.msk [vmem:[#allocation2 + $0xd8] sm:$0x1] (!%p423_p2), %vm962_vm3, %v2364_v18 }
   0xd   : > { %s2818_s30 = smov (!%p473_p3, %s1964_s30), 1  ;;  %974 = vst.msk [vmem:[#allocation2 + $0xf0] sm:$0x1] %vm962_vm3, %v2364_v18  ;;  %975 = vst.msk [vmem:[#allocation2 + $0x108] sm:$0x1] %vm962_vm3, %v2364_v18 }
   0xe   : > { %s2048_s17 = sshll.u32 %s2818_s30, 7  ;;  %976 = vst.msk [vmem:[#allocation2 + $0x120] sm:$0x1] %vm962_vm3, %v2364_v18  ;;  %977 = vst.msk [vmem:[#allocation2 + $0x138] sm:$0x1] %vm962_vm3, %v2364_v18  ;;  %s2049_s23 = sshll.u32 %s2818_s30, 5 }
   0xf   : > { %s2462_s20 = scalar_lea.vmem %s2802_s0, %s2048_s17  ;;  %978 = vst.msk [vmem:[#allocation2 + $0x150] sm:$0x1] %vm962_vm3, %v2364_v18  ;;  %979 = vst.msk [vmem:[#allocation2 + $0x168] sm:$0x1] %vm962_vm3, %v2364_v18  ;;  %s482_s26 = scalar_lea.vmem %s2803_s1, %s2049_s23 }
  0x10   : > { %v2333_v2 = vld [vmem:[%s2462_s20] sm:$0xff]   ;;  %v2334_v3 = vld [vmem:[%s2462_s20 + $0x8] sm:$0xff]   ;;  %v2335_v4 = vld [vmem:[%s2462_s20 + $0x10] sm:$0xff]   ;;  %980 = vst.msk [vmem:[#allocation2 + $0x180] sm:$0x1] %vm962_vm3, %v2364_v18  ;;  %s2050_s25 = sshll.u32 %s2818_s30, 6 }
  0x11   : > { %2095 = vmatprep.mubr.msk.bf16.mxu0 %vm602_vm1, %v2333_v2  ;;  %v2336_v5 = vld [vmem:[%s2462_s20 + $0x18] sm:$0xff]   ;;  %v2337_v6 = vld [vmem:[%s2462_s20 + $0x20] sm:$0xff]   ;;  %v2345_v7 = vld [vmem:[%s2462_s20 + $0x70] sm:$0xff]   ;;  %964 = vst.msk [vmem:[#allocation2] sm:$0x1] %vm962_vm3, %v2364_v18 }
  0x12   : > { %2096 = vmatmul.mubr.msk.bf16.vlgmr.msra.gmra.mrb[0].mxu0 %vm602_vm1, %v2334_v3  ;;  %v2346_v8 = vld [vmem:[%s2462_s20 + $0x78] sm:$0xff]   ;;  %2123 = vmatprep.mubr.msk.bf16.mxu1 %vm602_vm1, %v2345_v7  ;;  %v2338_v9 = vld [vmem:[%s2462_s20 + $0x28] sm:$0xff]   ;;  %v2339_v10 = vld [vmem:[%s2462_s20 + $0x30] sm:$0xff]  }
  0x13   : > { %2099 = vmatprep.mubr.msk.bf16.mxu0 %vm602_vm1, %v2335_v4  ;;  %2124 = vmatmul.mubr.msk.bf16.vlgmr.msra.gmra.mrb[0].mxu1 %vm602_vm1, %v2346_v8  ;;  %v2340_v11 = vld [vmem:[%s2462_s20 + $0x38] sm:$0xff]   ;;  %v2341_v12 = vld [vmem:[%s2462_s20 + $0x40] sm:$0xff]   ;;  %v2342_v13 = vld [vmem:[%s2462_s20 + $0x48] sm:$0xff]  }
  0x14   : > { %v2343_v14 = vld [vmem:[%s2462_s20 + $0x50] sm:$0xff]   ;;  %v2344_v15 = vld [vmem:[%s2462_s20 + $0x58] sm:$0xff]   ;;  %v2347_v16 = vld [vmem:[%s2462_s20 + $0x60] sm:$0xff]  }
  0x15   : > { %v2348_v17 = vld [vmem:[%s2462_s20 + $0x68] sm:$0xff]  }
  0x1a   : > { %2100 = vmatmul.mubr.msk.bf16.gmra.mrb[4].mxu0 %vm602_vm1, %v2336_v5 }
  0x1b   : > { %2103 = vmatprep.mubr.msk.bf16.mxu0 %vm602_vm1, %v2337_v6 }
  0x22   : > { %2104 = vmatmul.mubr.msk.bf16.gmra.mrb[8].mxu0 %vm602_vm1, %v2338_v9 }
  0x23   : > { %2107 = vmatprep.mubr.msk.bf16.mxu0 %vm602_vm1, %v2339_v10 }
  0x2a   : > { %2108 = vmatmul.mubr.msk.bf16.gmra.mrb[12].mxu0 %vm602_vm1, %v2340_v11 }
  0x2b   : > { %2111 = vmatprep.mubr.msk.bf16.mxu0 %vm602_vm1, %v2341_v12 }
  0x32   : > { %2112 = vmatmul.mubr.msk.bf16.gmra.mrb[16].mxu0 %vm602_vm1, %v2342_v13 }
  0x33   : > { %2115 = vmatprep.mubr.msk.bf16.mxu0 %vm602_vm1, %v2343_v14 }
  0x3a   : > { %2116 = vmatmul.mubr.msk.bf16.gmra.mrb[20].mxu0 %vm602_vm1, %v2344_v15 }
  0x3b   : > { %2119 = vmatprep.mubr.msk.bf16.mxu0 %vm602_vm1, %v2347_v16 }
  0x42   : > { %2120 = vmatmul.mubr.msk.bf16.gmra.mrb[24].mxu0 %vm602_vm1, %v2348_v17 }
  0xe5   : > { %v2097_v20 = vpop.f32.mrb[0].mxu0 }
  0xe6   : > { %v825_v22 = vmul.f32 %v2097_v20, %v2519_v19  ;;  %v689_v23 = vpop.f32.mrb[1].mxu0  ;;  %v2125_v47 = vpop.f32.mrb[0].mxu1 }
  0xe7   : > { %v823_v24 = vmul.f32 %v2519_v19, %v689_v23  ;;  %v2098_v25 = vpop.f32.mrb[2].mxu0  ;;  %v853_v50 = vmul.f32 %v2125_v47, %v2519_v19  ;;  %v801_v51 = vpop.f32.mrb[1].mxu1 }
  0xe8   : > { %v864_v26 = vadd.f32 %v2524_v21, %v825_v22  ;;  %v826_v27 = vmul.f32 %v2098_v25, %v2519_v19  ;;  %v692_v28 = vpop.f32.mrb[3].mxu0  ;;  %v851_v54 = vmul.f32 %v2519_v19, %v801_v51  ;;  %v2126_v55 = vpop.f32.mrb[2].mxu1 }
  0xe9   : > { %v862_v29 = vadd.f32 %v2524_v21, %v823_v24  ;;  %v824_v30 = vmul.f32 %v2519_v19, %v692_v28  ;;  %v892_v57 = vadd.f32 %v2524_v21, %v853_v50  ;;  %v854_v58 = vmul.f32 %v2126_v55, %v2519_v19  ;;  %v804_v59 = vpop.f32.mrb[3].mxu1 }
  0xea   : > { %v896_v31 = vmax.f32 %v864_v26, 0.0  ;;  %v865_v32 = vadd.f32 %v2524_v21, %v826_v27  ;;  %v890_v62 = vadd.f32 %v2524_v21, %v851_v54  ;;  %v852_v63 = vmul.f32 %v2519_v19, %v804_v59 }
  0xeb   : > { %v894_v33 = vmax.f32 %v862_v29, 0.0  ;;  %v863_v34 = vadd.f32 %v2524_v21, %v824_v30  ;;  %v924_v2 = vmax.f32 %v892_v57, 0.0  ;;  %v893_v3 = vadd.f32 %v2524_v21, %v854_v58 }
  0xec   : > { %930 = vst.msk [vmem:[#allocation2 + $0x31] sm:$0xff] %vm927_vm2, %v896_v31  ;;  %v897_v35 = vmax.f32 %v865_v32, 0.0  ;;  %v922_v6 = vmax.f32 %v890_v62, 0.0  ;;  %v891_v7 = vadd.f32 %v2524_v21, %v852_v63 }
  0xed   : > { %928 = vst.msk [vmem:[#allocation2 + $0x19] sm:$0xff] %vm927_vm2, %v894_v33  ;;  %v895_v36 = vmax.f32 %v863_v34, 0.0  ;;  %v2101_v37 = vpop.f32.mrb[4].mxu0  ;;  %958 = vst.msk [vmem:[#allocation2 + $0x181] sm:$0xff] %vm927_vm2, %v924_v2  ;;  %v925_v11 = vmax.f32 %v893_v3, 0.0 }
  0xee   : > { %931 = vst.msk [vmem:[#allocation2 + $0x39] sm:$0xff] %vm927_vm2, %v897_v35  ;;  %v829_v38 = vmul.f32 %v2101_v37, %v2519_v19  ;;  %v705_v39 = vpop.f32.mrb[5].mxu0  ;;  %956 = vst.msk [vmem:[#allocation2 + $0x169] sm:$0xff] %vm927_vm2, %v922_v6  ;;  %v923_v14 = vmax.f32 %v891_v7, 0.0 }
  0xef   : > { %929 = vst.msk [vmem:[#allocation2 + $0x21] sm:$0xff] %vm927_vm2, %v895_v36  ;;  %v827_v40 = vmul.f32 %v2519_v19, %v705_v39  ;;  %v2102_v41 = vpop.f32.mrb[6].mxu0  ;;  %959 = vst.msk [vmem:[#allocation2 + $0x189] sm:$0xff] %vm927_vm2, %v925_v11 }
  0xf0   : > { %v868_v42 = vadd.f32 %v2524_v21, %v829_v38  ;;  %v830_v43 = vmul.f32 %v2102_v41, %v2519_v19  ;;  %v708_v44 = vpop.f32.mrb[7].mxu0  ;;  %957 = vst.msk [vmem:[#allocation2 + $0x171] sm:$0xff] %vm927_vm2, %v923_v14 }
  0xf1   : > { %v866_v45 = vadd.f32 %v2524_v21, %v827_v40  ;;  %v828_v46 = vmul.f32 %v2519_v19, %v708_v44 }
  0xf2   : > { %v900_v48 = vmax.f32 %v868_v42, 0.0  ;;  %v869_v49 = vadd.f32 %v2524_v21, %v830_v43 }
  0xf3   : > { %v898_v52 = vmax.f32 %v866_v45, 0.0  ;;  %v867_v53 = vadd.f32 %v2524_v21, %v828_v46 }
  0xf4   : > { %934 = vst.msk [vmem:[#allocation2 + $0x61] sm:$0xff] %vm927_vm2, %v900_v48  ;;  %v901_v56 = vmax.f32 %v869_v49, 0.0 }
  0xf5   : > { %932 = vst.msk [vmem:[#allocation2 + $0x49] sm:$0xff] %vm927_vm2, %v898_v52  ;;  %v899_v60 = vmax.f32 %v867_v53, 0.0  ;;  %v2105_v61 = vpop.f32.mrb[8].mxu0 }
  0xf6   : > { %935 = vst.msk [vmem:[#allocation2 + $0x69] sm:$0xff] %vm927_vm2, %v901_v56  ;;  %v833_v0 = vmul.f32 %v2105_v61, %v2519_v19  ;;  %v721_v1 = vpop.f32.mrb[9].mxu0 }
  0xf7   : > { %933 = vst.msk [vmem:[#allocation2 + $0x51] sm:$0xff] %vm927_vm2, %v899_v60  ;;  %v831_v4 = vmul.f32 %v2519_v19, %v721_v1  ;;  %v2106_v5 = vpop.f32.mrb[10].mxu0 }
  0xf8   : > { %v872_v8 = vadd.f32 %v2524_v21, %v833_v0  ;;  %v834_v9 = vmul.f32 %v2106_v5, %v2519_v19  ;;  %v724_v10 = vpop.f32.mrb[11].mxu0 }
  0xf9   : > { %v870_v12 = vadd.f32 %v2524_v21, %v831_v4  ;;  %v832_v13 = vmul.f32 %v2519_v19, %v724_v10 }
  0xfa   : > { %v904_v15 = vmax.f32 %v872_v8, 0.0  ;;  %v873_v16 = vadd.f32 %v2524_v21, %v834_v9 }
  0xfb   : > { %v902_v17 = vmax.f32 %v870_v12, 0.0  ;;  %v871_v18 = vadd.f32 %v2524_v21, %v832_v13  ;;  %v2349_v12 = vld [vmem:[%s2807_s5 + $0x8] sm:$0x3f]  }
  0xfc   : > { %938 = vst.msk [vmem:[#allocation2 + $0x91] sm:$0xff] %vm927_vm2, %v904_v15  ;;  %v905_v20 = vmax.f32 %v873_v16, 0.0  ;;  %2197 = vmatprep.subr.msk.bf16.mxu1 %vm1221_vm4, %v2349_v12 }
  0xfd   : > { %936 = vst.msk [vmem:[#allocation2 + $0x79] sm:$0xff] %vm927_vm2, %v902_v17  ;;  %v903_v22 = vmax.f32 %v871_v18, 0.0  ;;  %v2109_v23 = vpop.f32.mrb[12].mxu0 }
  0xfe   : > { %939 = vst.msk [vmem:[#allocation2 + $0x99] sm:$0xff] %vm927_vm2, %v905_v20  ;;  %v837_v24 = vmul.f32 %v2109_v23, %v2519_v19  ;;  %v737_v25 = vpop.f32.mrb[13].mxu0  ;;  %v1223_v20 = vsel %vm1221_vm4, %v2349_v12, 0 }
  0xff   : > { %937 = vst.msk [vmem:[#allocation2 + $0x81] sm:$0xff] %vm927_vm2, %v903_v22  ;;  %v835_v26 = vmul.f32 %v2519_v19, %v737_v25  ;;  %v2110_v27 = vpop.f32.mrb[14].mxu0  ;;  %2128 = vmatpush3.bf16.msra.mxu1 %v1223_v20 }
 0x100   : > { %v876_v28 = vadd.f32 %v2524_v21, %v837_v24  ;;  %v838_v29 = vmul.f32 %v2110_v27, %v2519_v19  ;;  %v740_v30 = vpop.f32.mrb[15].mxu0 }
 0x101   : > { %v874_v31 = vadd.f32 %v2524_v21, %v835_v26  ;;  %v836_v32 = vmul.f32 %v2519_v19, %v740_v30 }
 0x102   : > { %v908_v33 = vmax.f32 %v876_v28, 0.0  ;;  %v877_v34 = vadd.f32 %v2524_v21, %v838_v29 }
 0x103   : > { %v906_v35 = vmax.f32 %v874_v31, 0.0  ;;  %v875_v36 = vadd.f32 %v2524_v21, %v836_v32 }
 0x104   : > { %942 = vst.msk [vmem:[#allocation2 + $0xc1] sm:$0xff] %vm927_vm2, %v908_v33  ;;  %v909_v37 = vmax.f32 %v877_v34, 0.0  ;;  %v1106_v34 = vld [vmem:[#allocation2 + $0x171] sm:$0xff] }
 0x105   : > { %940 = vst.msk [vmem:[#allocation2 + $0xa9] sm:$0xff] %vm927_vm2, %v906_v35  ;;  %v907_v38 = vmax.f32 %v875_v36, 0.0  ;;  %v2113_v39 = vpop.f32.mrb[16].mxu0  ;;  %v1107_v35 = vld [vmem:[#allocation2 + $0x189] sm:$0xff] }
 0x106   : > { %943 = vst.msk [vmem:[#allocation2 + $0xc9] sm:$0xff] %vm927_vm2, %v909_v37  ;;  %v841_v40 = vmul.f32 %v2113_v39, %v2519_v19  ;;  %v753_v41 = vpop.f32.mrb[17].mxu0  ;;  %v2631_v39 = vld [vmem:[%s2807_s5] sm:$0x3f]  }
 0x107   : > { %941 = vst.msk [vmem:[#allocation2 + $0xb1] sm:$0xff] %vm927_vm2, %v907_v38  ;;  %v839_v42 = vmul.f32 %v2519_v19, %v753_v41  ;;  %v2114_v43 = vpop.f32.mrb[18].mxu0  ;;  %v1114_v41 = vld [vmem:[#allocation2 + $0x169] sm:$0xff]  ;;  %2198 = vmatprep.subr.msk.bf16.mxu1 %vm1221_vm4, %v2631_v39 }
 0x108   : > { %v880_v44 = vadd.f32 %v2524_v21, %v841_v40  ;;  %v842_v45 = vmul.f32 %v2114_v43, %v2519_v19  ;;  %v756_v46 = vpop.f32.mrb[19].mxu0  ;;  %v2228_v40 = vpack.i.bf16 %v1107_v35, %v1106_v34 }
 0x109   : > { %v878_v47 = vadd.f32 %v2524_v21, %v839_v42  ;;  %v840_v48 = vmul.f32 %v2519_v19, %v756_v46  ;;  %v1115_v42 = vld [vmem:[#allocation2 + $0x181] sm:$0xff]  ;;  %v992_v46 = vld [vmem:[#allocation2 + $0x51] sm:$0xff] }
 0x10a   : > { %v912_v49 = vmax.f32 %v880_v44, 0.0  ;;  %v881_v50 = vadd.f32 %v2524_v21, %v842_v45  ;;  %v2248_v43 = vpack.i.bf16 %v1115_v42, %v1114_v41 }
 0x10b   : > { %v910_v51 = vmax.f32 %v878_v47, 0.0  ;;  %v879_v52 = vadd.f32 %v2524_v21, %v840_v48  ;;  %v991_v48 = vld [vmem:[#allocation2 + $0x39] sm:$0xff] }
 0x10c   : > { %946 = vst.msk [vmem:[#allocation2 + $0xf1] sm:$0xff] %vm927_vm2, %v912_v49  ;;  %v913_v53 = vmax.f32 %v881_v50, 0.0 }
 0x10d   : > { %944 = vst.msk [vmem:[#allocation2 + $0xd9] sm:$0xff] %vm927_vm2, %v910_v51  ;;  %v911_v54 = vmax.f32 %v879_v52, 0.0  ;;  %v2117_v55 = vpop.f32.mrb[20].mxu0  ;;  %v2258_v51 = vpack.i.bf16 %v992_v46, %v991_v48  ;;  %v1000_v52 = vld [vmem:[#allocation2 + $0x49] sm:$0xff] }
 0x10e   : > { %947 = vst.msk [vmem:[#allocation2 + $0xf9] sm:$0xff] %vm927_vm2, %v913_v53  ;;  %v845_v56 = vmul.f32 %v2117_v55, %v2519_v19  ;;  %v769_v57 = vpop.f32.mrb[21].mxu0  ;;  %v989_v55 = vld [vmem:[#allocation2 + $0x9] sm:$0xff] }
 0x10f   : > { %945 = vst.msk [vmem:[#allocation2 + $0xe1] sm:$0xff] %vm927_vm2, %v911_v54  ;;  %v843_v58 = vmul.f32 %v2519_v19, %v769_v57  ;;  %v2118_v59 = vpop.f32.mrb[22].mxu0  ;;  %v999_v54 = vld [vmem:[#allocation2 + $0x31] sm:$0xff]  ;;  %v1390_v12 = vld [vmem:[#allocation2 + $0xc9] sm:$0xff] }
 0x110   : > { %v884_v60 = vadd.f32 %v2524_v21, %v845_v56  ;;  %v846_v61 = vmul.f32 %v2118_v59, %v2519_v19  ;;  %v772_v62 = vpop.f32.mrb[23].mxu0  ;;  %v990_v56 = vld [vmem:[#allocation2 + $0x21] sm:$0xff]  ;;  %v2268_v57 = vpack.i.bf16 %v1000_v52, %v999_v54 }
 0x111   : > { %v882_v63 = vadd.f32 %v2524_v21, %v843_v58  ;;  %v844_v0 = vmul.f32 %v2519_v19, %v772_v62  ;;  %v996_v58 = vld [vmem:[#allocation2 + $0xb1] sm:$0xff]  ;;  %v2253_v59 = vpack.i.bf16 %v990_v56, %v989_v55  ;;  %v998_v62 = vld [vmem:[#allocation2 + $0x19] sm:$0xff] }
 0x112   : > { %v916_v1 = vmax.f32 %v884_v60, 0.0  ;;  %v885_v2 = vadd.f32 %v2524_v21, %v846_v61  ;;  %v995_v60 = vld [vmem:[#allocation2 + $0x99] sm:$0xff]  ;;  %v997_v61 = vld [vmem:[#allocation2 + $0x1] sm:$0xff] }
 0x113   : > { %v914_v3 = vmax.f32 %v882_v63, 0.0  ;;  %v883_v4 = vadd.f32 %v2524_v21, %v844_v0  ;;  %v1109_v5 = vld [vmem:[#allocation2 + $0xf1] sm:$0xff]  ;;  %v2278_v63 = vpack.i.bf16 %v996_v58, %v995_v60  ;;  %v1004_v0 = vld [vmem:[#allocation2 + $0xa9] sm:$0xff] }
 0x114   : > { %950 = vst.msk [vmem:[#allocation2 + $0x121] sm:$0xff] %vm927_vm2, %v916_v1  ;;  %v917_v6 = vmax.f32 %v885_v2, 0.0  ;;  %v1108_v7 = vld [vmem:[#allocation2 + $0xd9] sm:$0xff]  ;;  %v2263_v1 = vpack.i.bf16 %v998_v62, %v997_v61  ;;  %v1003_v2 = vld [vmem:[#allocation2 + $0x91] sm:$0xff]  ;;  %v1098_v61 = vld [vmem:[#allocation2 + $0x168] sm:$0xff] }
 0x115   : > { %948 = vst.msk [vmem:[#allocation2 + $0x109] sm:$0xff] %vm927_vm2, %v914_v3  ;;  %v915_v8 = vmax.f32 %v883_v4, 0.0  ;;  %v2121_v9 = vpop.f32.mrb[24].mxu0  ;;  %v2213_v10 = vpack.i.bf16 %v1109_v5, %v1108_v7  ;;  %v1101_v11 = vld [vmem:[#allocation2 + $0xf9] sm:$0xff]  ;;  %v994_v3 = vld [vmem:[#allocation2 + $0x81] sm:$0xff]  ;;  %v2288_v4 = vpack.i.bf16 %v1004_v0, %v1003_v2  ;;  %v993_v5 = vld [vmem:[#allocation2 + $0x69] sm:$0xff] }
 0x116   : > { %951 = vst.msk [vmem:[#allocation2 + $0x129] sm:$0xff] %vm927_vm2, %v917_v6  ;;  %v849_v13 = vmul.f32 %v2121_v9, %v2519_v19  ;;  %v785_v14 = vpop.f32.mrb[25].mxu0  ;;  %v1100_v15 = vld [vmem:[#allocation2 + $0xe1] sm:$0xff]  ;;  %v2273_v6 = vpack.i.bf16 %v994_v3, %v993_v5  ;;  %v1002_v7 = vld [vmem:[#allocation2 + $0x79] sm:$0xff]  ;;  %v2313_v20 = vpack.i.bf16 %v995_v60, %v994_v3 }
 0x117   : > { %949 = vst.msk [vmem:[#allocation2 + $0x111] sm:$0xff] %vm927_vm2, %v915_v8  ;;  %v847_v16 = vmul.f32 %v2519_v19, %v785_v14  ;;  %2214 = vrot.lane.b32.xlu1 %v2213_v10, %s2365_s27  ;;  %v2122_v17 = vpop.f32.mrb[26].mxu0  ;;  %v2218_v18 = vpack.i.bf16 %v1101_v11, %v1100_v15  ;;  %v2298_v8 = vpack.i.bf16 %v993_v5, %v992_v46  ;;  %v1001_v9 = vld [vmem:[#allocation2 + $0x61] sm:$0xff] }
 0x118   : > { %v888_v22 = vadd.f32 %v2524_v21, %v849_v13  ;;  %v850_v23 = vmul.f32 %v2122_v17, %v2519_v19  ;;  %v788_v24 = vpop.f32.mrb[27].mxu0  ;;  %v2283_v10 = vpack.i.bf16 %v1002_v7, %v1001_v9  ;;  %v2308_v11 = vpack.i.bf16 %v1001_v9, %v1000_v52  ;;  %v1398_v15 = vld [vmem:[#allocation2 + $0xc1] sm:$0xff] }
 0x119   : > { %v886_v25 = vadd.f32 %v2524_v21, %v847_v16  ;;  %v848_v26 = vmul.f32 %v2519_v19, %v788_v24  ;;  %2219 = vrot.lane.b32.xlu0 %v2218_v18, %s2366_s28  ;;  %v2293_v13 = vpack.i.bf16 %v991_v48, %v990_v56  ;;  %v2318_v14 = vpack.i.bf16 %v1390_v12, %v996_v58  ;;  %v1741_v18 = vld [vmem:[%s2813_s11] sm:$0xf] }
 0x11a   : > { %v920_v27 = vmax.f32 %v888_v22, 0.0  ;;  %v889_v28 = vadd.f32 %v2524_v21, %v850_v23  ;;  %v2303_v16 = vpack.i.bf16 %v999_v54, %v998_v62  ;;  %v2328_v17 = vpack.i.bf16 %v1398_v15, %v1004_v0  ;;  %2201 = vmatprep.subr.msk.bf16.mxu0 %vm651_vm0, %v1741_v18 }
 0x11b   : > { %v918_v29 = vmax.f32 %v886_v25, 0.0  ;;  %v887_v30 = vadd.f32 %v2524_v21, %v848_v26  ;;  %v1111_v31 = vld [vmem:[#allocation2 + $0x121] sm:$0xff]  ;;  %v1775_v22 = vsel %vm651_vm0, %v1741_v18, 0  ;;  %v2323_v23 = vpack.i.bf16 %v1003_v2, %v1002_v7 }
 0x11c   : > { %954 = vst.msk [vmem:[#allocation2 + $0x151] sm:$0xff] %vm927_vm2, %v920_v27  ;;  %v921_v32 = vmax.f32 %v889_v28, 0.0  ;;  %v1110_v33 = vld [vmem:[#allocation2 + $0x109] sm:$0xff]  ;;  %2168 = vmatpush3.bf16.msra.mxu0 %v1775_v22 }
 0x11d   : > { %952 = vst.msk [vmem:[#allocation2 + $0x139] sm:$0xff] %vm927_vm2, %v918_v29  ;;  %v919_v36 = vmax.f32 %v887_v30, 0.0  ;;  %v2223_v19 = vpack.i.bf16 %v1111_v31, %v1110_v33  ;;  %v1103_v37 = vld [vmem:[#allocation2 + $0x129] sm:$0xff]  ;;  %v1092_v30 = vld [vmem:[#allocation2 + $0xd8] sm:$0xff] }
 0x11e   : > { %955 = vst.msk [vmem:[#allocation2 + $0x159] sm:$0xff] %vm927_vm2, %v921_v32  ;;  %v1102_v38 = vld [vmem:[#allocation2 + $0x111] sm:$0xff]  ;;  %v1094_v42 = vld [vmem:[#allocation2 + $0x108] sm:$0xff] }
 0x11f   : > { %953 = vst.msk [vmem:[#allocation2 + $0x141] sm:$0xff] %vm927_vm2, %v919_v36  ;;  %2224 = vrot.lane.b32.xlu1 %v2223_v19, %s2365_s27  ;;  %v2233_v21 = vpack.i.bf16 %v1103_v37, %v1102_v38  ;;  %v1093_v31 = vld [vmem:[#allocation2 + $0xf0] sm:$0xff] }
 0x121   : > { %2234 = vrot.lane.b32.xlu0 %v2233_v21, %s2366_s28 }
 0x123   : > { %2229 = vrot.lane.b32.xlu1 %v2228_v40, %s2366_s28  ;;  %v1113_v50 = vld [vmem:[#allocation2 + $0x151] sm:$0xff] }
 0x124   : > { %v1112_v49 = vld [vmem:[#allocation2 + $0x139] sm:$0xff]  ;;  %v1097_v2 = vld [vmem:[#allocation2 + $0x150] sm:$0xff] }
 0x125   : > { %v1105_v44 = vld [vmem:[#allocation2 + $0x159] sm:$0xff]  ;;  %v2243_v53 = vpack.i.bf16 %v1113_v50, %v1112_v49  ;;  %v1308_v50 = vsel %vm1221_vm4, %v2631_v39, 0 }
 0x126   : > { %v1104_v45 = vld [vmem:[#allocation2 + $0x141] sm:$0xff] }
 0x127   : > { %2249 = vrot.lane.b32.xlu1 %v2248_v43, %s2365_s27  ;;  %v2238_v47 = vpack.i.bf16 %v1105_v44, %v1104_v45  ;;  %v1095_v43 = vld [vmem:[#allocation2 + $0x120] sm:$0xff] }
 0x128   : > { %v1099_v39 = vld [vmem:[#allocation2 + $0x180] sm:$0xff] }
 0x129   : > { %2239 = vrot.lane.b32.xlu0 %v2238_v47, %s2366_s28 }
 0x12b   : > { %2259 = vrot.lane.b32.xlu1 %v2258_v51, %s2366_s28  ;;  %v2351_v51 = vld [vmem:[%s2807_s5 + $0x10] sm:$0x3f]  }
 0x12d   : > { %2244 = vrot.lane.b32.xlu0 %v2243_v53, %s2365_s27 }
 0x12f   : > { %2269 = vrot.lane.b32.xlu1 %v2268_v57, %s2365_s27 }
 0x131   : > { %2254 = vrot.lane.b32.xlu0 %v2253_v59, %s2366_s28 }
 0x133   : > { %2279 = vrot.lane.b32.xlu1 %v2278_v63, %s2366_s28 }
 0x135   : > { %2264 = vrot.lane.b32.xlu0 %v2263_v1, %s2365_s27  ;;  %v1096_v1 = vld [vmem:[#allocation2 + $0x138] sm:$0xff] }
 0x137   : > { %2289 = vrot.lane.b32.xlu1 %v2288_v4, %s2365_s27 }
 0x139   : > { %2274 = vrot.lane.b32.xlu0 %v2273_v6, %s2366_s28 }
 0x13b   : > { %2299 = vrot.lane.b32.xlu1 %v2298_v8, %s2366_s28 }
 0x13d   : > { %2284 = vrot.lane.b32.xlu0 %v2283_v10, %s2365_s27 }
 0x13f   : > { %2309 = vrot.lane.b32.xlu1 %v2308_v11, %s2365_s27 }
 0x141   : > { %2294 = vrot.lane.b32.xlu0 %v2293_v13, %s2366_s28 }
 0x143   : > { %2319 = vrot.lane.b32.xlu1 %v2318_v14, %s2366_s28 }
 0x145   : > { %2304 = vrot.lane.b32.xlu0 %v2303_v16, %s2365_s27 }
 0x147   : > { %2329 = vrot.lane.b32.xlu1 %v2328_v17, %s2365_s27 }
 0x149   : > { %2314 = vrot.lane.b32.xlu0 %v2313_v20, %s2366_s28  ;;  %s2781_s28 = scalar_lea.vmem %s2816_s14, %s2050_s25 }
 0x14d   : > { %2324 = vrot.lane.b32.xlu0 %v2323_v23, %s2365_s27 }
 0x189   : > { %v2215_v24 = vpop.permute.xlu1 %2214 }
 0x18a   : > { %v2217_v28 = vunpack.i.h.bf16 %v2215_v24  ;;  %v2216_v29 = vunpack.i.l.bf16 %v2215_v24  ;;  %v981_v24 = vld [vmem:[#allocation2] sm:$0xff] }
 0x18b   : > { %v2220_v25 = vpop.permute.xlu0 %2219 }
 0x18c   : > { %v2222_v26 = vunpack.i.h.bf16 %v2220_v25  ;;  %v2221_v27 = vunpack.i.l.bf16 %v2220_v25  ;;  %v2689_v25 = vld [vmem:[#allocation2 + $0x30] sm:$0xff] }
 0x18e   : > { %v1181_v32 = vsel %vm927_vm2, %v1093_v31, %v2222_v26  ;;  %v1180_v33 = vsel %vm927_vm2, %v1092_v30, %v2221_v27  ;;  %v984_v26 = vld [vmem:[#allocation2 + $0x48] sm:$0xff]  ;;  %v2694_v30 = vld [vmem:[#allocation2 + $0x18] sm:$0xff] }
 0x18f   : > { %v1188_v34 = vsel %vm602_vm1, %v1180_v33, %v2216_v29  ;;  %v1189_v35 = vsel %vm602_vm1, %v1181_v32, %v2217_v28 }
 0x190   : > { %v1196_v36 = vpack.c.bf16 %v1189_v35, %v1188_v34 }
 0x191   : > { %v2225_v19 = vpop.permute.xlu1 %2224 }
 0x192   : > { %2129 = vmatprep.mubr.msk.bf16.mxu1 %vm1208_vm5, %v1196_v36  ;;  %v2227_v40 = vunpack.i.h.bf16 %v2225_v19  ;;  %v2226_v41 = vunpack.i.l.bf16 %v2225_v19 }
 0x193   : > { %v2235_v37 = vpop.permute.xlu0 %2234 }
 0x194   : > { %v2237_v38 = vunpack.i.h.bf16 %v2235_v37  ;;  %v2236_v21 = vunpack.i.l.bf16 %v2235_v37 }
 0x195   : > { %v2230_v44 = vpop.permute.xlu1 %2229 }
 0x196   : > { %v1183_v45 = vsel %vm927_vm2, %v1095_v43, %v2237_v38  ;;  %v1182_v46 = vsel %vm927_vm2, %v1094_v42, %v2236_v21  ;;  %v2232_v54 = vunpack.i.h.bf16 %v2230_v44  ;;  %v2231_v55 = vunpack.i.l.bf16 %v2230_v44 }
 0x197   : > { %v1191_v47 = vsel %vm602_vm1, %v1183_v45, %v2227_v40  ;;  %v1190_v48 = vsel %vm602_vm1, %v1182_v46, %v2226_v41  ;;  %v1504_v41 = vsel %vm1221_vm4, %v2351_v51, 0 }
 0x198   : > { %v1197_v49 = vpack.c.bf16 %v1191_v47, %v1190_v48  ;;  %v1187_v63 = vsel %vm927_vm2, %v1099_v39, %v2232_v54  ;;  %v1186_v0 = vsel %vm927_vm2, %v1098_v61, %v2231_v55 }
 0x199   : > { %v2250_v52 = vpop.permute.xlu1 %2249 }
 0x19a   : > { %2130 = vmatmul.mubr.msk.bf16.vlgmr.msra.gmra.mrb[4].mxu1 %vm1208_vm5, %v1197_v49  ;;  %v2252_v56 = vunpack.i.h.bf16 %v2250_v52  ;;  %v2251_v57 = vunpack.i.l.bf16 %v2250_v52  ;;  %v2709_v52 = vld [vmem:[#allocation2 + $0x90] sm:$0xff] }
 0x19b   : > { %v2240_v53 = vpop.permute.xlu0 %2239  ;;  %2138 = vmatpush3.bf16.msra.mxu1 %v1308_v50  ;;  %v1621_v50 = vld [vmem:[%s2810_s8] sm:$0x3] }
 0x19c   : > { %2199 = vmatprep.subr.msk.bf16.mxu1 %vm1221_vm4, %v2351_v51  ;;  %v2242_v58 = vunpack.i.h.bf16 %v2240_v53  ;;  %v2241_v59 = vunpack.i.l.bf16 %v2240_v53  ;;  %v1194_v5 = vsel %vm602_vm1, %v1186_v0, %v2251_v57  ;;  %v1195_v6 = vsel %vm602_vm1, %v1187_v63, %v2252_v56  ;;  %v988_v51 = vld [vmem:[#allocation2 + $0xa8] sm:$0xff]  ;;  %v985_v56 = vld [vmem:[#allocation2 + $0x60] sm:$0xff]  ;;  %v986_v57 = vld [vmem:[#allocation2 + $0x78] sm:$0xff] }
 0x19d   : > { %v2260_v60 = vpop.permute.xlu1 %2259  ;;  %v1199_v14 = vpack.c.bf16 %v1195_v6, %v1194_v5 }
 0x19e   : > { %v1185_v7 = vsel %vm927_vm2, %v1097_v2, %v2242_v58  ;;  %v1184_v8 = vsel %vm927_vm2, %v1096_v1, %v2241_v59  ;;  %v2262_v15 = vunpack.i.h.bf16 %v2260_v60  ;;  %v2261_v16 = vunpack.i.l.bf16 %v2260_v60 }
 0x19f   : > { %v2245_v62 = vpop.permute.xlu0 %2244 }
 0x1a0   : > { %v2247_v3 = vunpack.i.h.bf16 %v2245_v62  ;;  %v2246_v4 = vunpack.i.l.bf16 %v2245_v62  ;;  %v1072_v28 = vsel %vm927_vm2, %v984_v26, %v2262_v15  ;;  %v1071_v29 = vsel %vm927_vm2, %v2689_v25, %v2261_v16 }
 0x1a1   : > { %v2270_v9 = vpop.permute.xlu1 %2269 }
 0x1a2   : > { %v1192_v10 = vsel %vm602_vm1, %v1184_v8, %v2246_v4  ;;  %v1193_v11 = vsel %vm602_vm1, %v1185_v7, %v2247_v3  ;;  %v2272_v17 = vunpack.i.h.bf16 %v2270_v9  ;;  %v2271_v18 = vunpack.i.l.bf16 %v2270_v9 }
 0x1a3   : > { %v1198_v12 = vpack.c.bf16 %v1193_v11, %v1192_v10  ;;  %v2255_v13 = vpop.permute.xlu0 %2254 }
 0x1a4   : > { %v2257_v20 = vunpack.i.h.bf16 %v2255_v13  ;;  %v2256_v22 = vunpack.i.l.bf16 %v2255_v13  ;;  %v1079_v33 = vsel %vm602_vm1, %v1071_v29, %v2271_v18  ;;  %v1080_v34 = vsel %vm602_vm1, %v1072_v28, %v2272_v17 }
 0x1a5   : > { %v2280_v23 = vpop.permute.xlu1 %2279  ;;  %2133 = vmatprep.mubr.msk.bf16.mxu1 %vm1208_vm5, %v1198_v12  ;;  %v1086_v42 = vpack.c.bf16 %v1080_v34, %v1079_v33  ;;  %v1636_v33 = vsel %vm1634_vm6, %v1621_v50, 0 }
 0x1a6   : > { %2134 = vmatmul.mubr.msk.bf16.gmra.mrb[8].mxu1 %vm1208_vm5, %v1199_v14  ;;  %v1070_v35 = vsel %vm927_vm2, %v2694_v30, %v2257_v20  ;;  %v1069_v36 = vsel %vm927_vm2, %v981_v24, %v2256_v22  ;;  %v2282_v43 = vunpack.i.h.bf16 %v2280_v23  ;;  %v2281_v44 = vunpack.i.l.bf16 %v2280_v23 }
 0x1a7   : > { %v2265_v27 = vpop.permute.xlu0 %2264 }
 0x1a8   : > { %v2267_v31 = vunpack.i.h.bf16 %v2265_v27  ;;  %v2266_v32 = vunpack.i.l.bf16 %v2265_v27  ;;  %v1076_v54 = vsel %vm927_vm2, %v988_v51, %v2282_v43  ;;  %v1075_v55 = vsel %vm927_vm2, %v2709_v52, %v2281_v44 }
 0x1a9   : > { %v2290_v19 = vpop.permute.xlu1 %2289 }
 0x1aa   : > { %v1077_v37 = vsel %vm602_vm1, %v1069_v36, %v2266_v32  ;;  %v1078_v38 = vsel %vm602_vm1, %v1070_v35, %v2267_v31  ;;  %v2292_v45 = vunpack.i.h.bf16 %v2290_v19  ;;  %v2291_v46 = vunpack.i.l.bf16 %v2290_v19 }
 0x1ab   : > { %v1085_v21 = vpack.c.bf16 %v1078_v38, %v1077_v37  ;;  %v2275_v40 = vpop.permute.xlu0 %2274 }
 0x1ac   : > { %v2277_v47 = vunpack.i.h.bf16 %v2275_v40  ;;  %v2276_v48 = vunpack.i.l.bf16 %v2275_v40  ;;  %v1083_v60 = vsel %vm602_vm1, %v1075_v55, %v2291_v46  ;;  %v1084_v61 = vsel %vm602_vm1, %v1076_v54, %v2292_v45  ;;  %v2029_v55 = vld [vmem:[%s2809_s7] ss:$0 sm:$0xff] }
 0x1ad   : > { %v2300_v49 = vpop.permute.xlu1 %2299  ;;  %2139 = vmatprep.mubr.msk.bf16.mxu1 %vm1208_vm5, %v1085_v21  ;;  %v1088_v4 = vpack.c.bf16 %v1084_v61, %v1083_v60 }
 0x1ae   : > { %2140 = vmatmul.mubr.msk.bf16.vlgmr.msra.gmra.mrb[4].mxu1 %vm1208_vm5, %v1086_v42  ;;  %v1074_v39 = vsel %vm927_vm2, %v986_v57, %v2277_v47  ;;  %v1073_v62 = vsel %vm927_vm2, %v985_v56, %v2276_v48  ;;  %v2302_v5 = vunpack.i.h.bf16 %v2300_v49  ;;  %v2301_v6 = vunpack.i.l.bf16 %v2300_v49  ;;  %v2352_v49 = vld [vmem:[%s482_s26] sm:$0xff]  }
 0x1af   : > { %2148 = vmatpush3.bf16.msra.mxu1 %v1504_v41  ;;  %v2285_v53 = vpop.permute.xlu0 %2284  ;;  %2169 = vmatprep.mubr.msk.bf16.mxu0 %vm602_vm1, %v2352_v49 }
 0x1b0   : > { %v2287_v58 = vunpack.i.h.bf16 %v2285_v53  ;;  %v2286_v59 = vunpack.i.l.bf16 %v2285_v53  ;;  %2200 = vmatprep.subr.msk.bf16.mxu1 %vm1634_vm6, %v1621_v50  ;;  %v1466_v13 = vsel %vm927_vm2, %v985_v56, %v2302_v5  ;;  %v1465_v14 = vsel %vm927_vm2, %v984_v26, %v2301_v6  ;;  %v2353_v50 = vld [vmem:[%s482_s26 + $0x8] sm:$0xff]   ;;  %v2028_v53 = vld [vmem:[%s2808_s6] ss:$0 sm:$0xff] }
 0x1b1   : > { %v2310_v63 = vpop.permute.xlu1 %2309  ;;  %2170 = vmatmul.mubr.msk.bf16.vlgmr.msra.gmra.mrb[28].mxu0 %vm602_vm1, %v2353_v50 }
 0x1b2   : > { %v1081_v0 = vsel %vm602_vm1, %v1073_v62, %v2286_v59  ;;  %v1082_v1 = vsel %vm602_vm1, %v1074_v39, %v2287_v58  ;;  %v2312_v7 = vunpack.i.h.bf16 %v2310_v63  ;;  %v2311_v8 = vunpack.i.l.bf16 %v2310_v63 }
 0x1b3   : > { %v1087_v2 = vpack.c.bf16 %v1082_v1, %v1081_v0  ;;  %v2295_v3 = vpop.permute.xlu0 %2294 }
 0x1b4   : > { %v2297_v9 = vunpack.i.h.bf16 %v2295_v3  ;;  %v2296_v10 = vunpack.i.l.bf16 %v2295_v3  ;;  %v1473_v17 = vsel %vm602_vm1, %v1465_v14, %v2311_v8  ;;  %v1474_v18 = vsel %vm602_vm1, %v1466_v13, %v2312_v7 }
 0x1b5   : > { %v2320_v11 = vpop.permute.xlu1 %2319  ;;  %2143 = vmatprep.mubr.msk.bf16.mxu1 %vm1208_vm5, %v1087_v2  ;;  %v1480_v26 = vpack.c.bf16 %v1474_v18, %v1473_v17 }
 0x1b6   : > { %2144 = vmatmul.mubr.msk.bf16.gmra.mrb[8].mxu1 %vm1208_vm5, %v1088_v4  ;;  %v1464_v20 = vsel %vm927_vm2, %v2689_v25, %v2297_v9  ;;  %v1463_v22 = vsel %vm927_vm2, %v2694_v30, %v2296_v10  ;;  %v2322_v31 = vunpack.i.h.bf16 %v2320_v11  ;;  %v2321_v32 = vunpack.i.l.bf16 %v2320_v11  ;;  %v1382_v25 = vld [vmem:[#allocation2 + $0xc0] sm:$0xff] }
 0x1b7   : > { %v2305_v12 = vpop.permute.xlu0 %2304 }
 0x1b8   : > { %v2307_v15 = vunpack.i.h.bf16 %v2305_v12  ;;  %v2306_v16 = vunpack.i.l.bf16 %v2305_v12  ;;  %v1470_v37 = vsel %vm927_vm2, %v1382_v25, %v2322_v31  ;;  %v1469_v38 = vsel %vm927_vm2, %v988_v51, %v2321_v32  ;;  %v2355_v51 = vld [vmem:[%s482_s26 + $0x18] sm:$0xff]   ;;  %v2044_v25 = vld [vmem:[%s2814_s12] ss:$0 sm:$0xff] }
 0x1b9   : > { %v2330_v27 = vpop.permute.xlu1 %2329 }
 0x1ba   : > { %v1471_v23 = vsel %vm602_vm1, %v1463_v22, %v2306_v16  ;;  %v1472_v24 = vsel %vm602_vm1, %v1464_v20, %v2307_v15  ;;  %v2332_v34 = vunpack.i.h.bf16 %v2330_v27  ;;  %v2331_v35 = vunpack.i.l.bf16 %v2330_v27 }
 0x1bb   : > { %v1479_v28 = vpack.c.bf16 %v1472_v24, %v1471_v23  ;;  %v2315_v29 = vpop.permute.xlu0 %2314 }
 0x1bc   : > { %v2317_v36 = vunpack.i.h.bf16 %v2315_v29  ;;  %v2316_v19 = vunpack.i.l.bf16 %v2315_v29  ;;  %v1477_v41 = vsel %vm602_vm1, %v1469_v38, %v2331_v35  ;;  %v1478_v42 = vsel %vm602_vm1, %v1470_v37, %v2332_v34  ;;  %v2045_v37 = vld [vmem:[%s2815_s13] ss:$0 sm:$0xff] }
 0x1bd   : > { %2149 = vmatprep.mubr.msk.bf16.mxu1 %vm1208_vm5, %v1479_v28  ;;  %v1482_v48 = vpack.c.bf16 %v1478_v42, %v1477_v41  ;;  %v2035_v42 = vld [vmem:[%s2812_s10] ss:$0 sm:$0xff] }
 0x1be   : > { %2150 = vmatmul.mubr.msk.bf16.vlgmr.msra.gmra.mrb[4].mxu1 %vm1208_vm5, %v1480_v26  ;;  %v1468_v43 = vsel %vm927_vm2, %v2709_v52, %v2317_v36  ;;  %v1467_v44 = vsel %vm927_vm2, %v986_v57, %v2316_v19  ;;  %v2354_v52 = vld [vmem:[%s482_s26 + $0x10] sm:$0xff]  }
 0x1bf   : > { %v2325_v30 = vpop.permute.xlu0 %2324  ;;  %2158 = vmatpush3.bf16.msra.mxu1 %v1636_v33  ;;  %2173 = vmatprep.mubr.msk.bf16.mxu0 %vm602_vm1, %v2354_v52 }
 0x1c0   : > { %v2327_v21 = vunpack.i.h.bf16 %v2325_v30  ;;  %v2326_v40 = vunpack.i.l.bf16 %v2325_v30  ;;  %2174 = vmatmul.mubr.msk.bf16.gmra.mrb[32].mxu0 %vm602_vm1, %v2355_v51 }
 0x1c2   : > { %v1475_v45 = vsel %vm602_vm1, %v1467_v44, %v2326_v40  ;;  %v1476_v46 = vsel %vm602_vm1, %v1468_v43, %v2327_v21  ;;  %v2034_v21 = vld [vmem:[%s2811_s9] ss:$0 sm:$0xff] }
 0x1c3   : > { %v1481_v47 = vpack.c.bf16 %v1476_v46, %v1475_v45 }
 0x1c5   : > { %2153 = vmatprep.mubr.msk.bf16.mxu1 %vm1208_vm5, %v1481_v47 }
 0x1c6   : > { %2154 = vmatmul.mubr.msk.bf16.gmra.mrb[8].mxu1 %vm1208_vm5, %v1482_v48 }
 0x284   : > { %v2171_v26 = vpop.f32.mrb[28].mxu0 }
 0x285   : > { %v1811_v31 = vpop.f32.mrb[29].mxu0  ;;  %v1851_v30 = vmul.f32 %v2171_v26, %v2044_v25 }
 0x286   : > { %v2172_v32 = vpop.f32.mrb[30].mxu0  ;;  %v1849_v38 = vmul.f32 %v2044_v25, %v1811_v31 }
 0x287   : > { %v1814_v33 = vpop.f32.mrb[31].mxu0  ;;  %v1852_v40 = vmul.f32 %v2172_v32, %v2044_v25  ;;  %v1866_v43 = vadd.f32 %v2045_v37, %v1851_v30 }
 0x288   : > { %v1850_v45 = vmul.f32 %v2044_v25, %v1814_v33  ;;  %v1864_v47 = vadd.f32 %v2045_v37, %v1849_v38 }
 0x291   : > { %v2151_v54 = vpop.f32.mrb[4].mxu1 }
 0x292   : > { %v1588_v56 = vmul.f32 %v2151_v54, %v2028_v53  ;;  %v1540_v57 = vpop.f32.mrb[5].mxu1 }
 0x293   : > { %v1586_v58 = vmul.f32 %v2028_v53, %v1540_v57  ;;  %v2152_v59 = vpop.f32.mrb[6].mxu1  ;;  %v2175_v34 = vpop.f32.mrb[32].mxu0  ;;  %v1865_v57 = vadd.f32 %v2045_v37, %v1850_v45 }
 0x294   : > { %v1603_v60 = vadd.f32 %v2029_v55, %v1588_v56  ;;  %v1589_v61 = vmul.f32 %v2152_v59, %v2028_v53  ;;  %v1543_v39 = vpop.f32.mrb[7].mxu1  ;;  %v1827_v35 = vpop.f32.mrb[33].mxu0  ;;  %v1855_v59 = vmul.f32 %v2175_v34, %v2044_v25 }
 0x295   : > { %v1601_v62 = vadd.f32 %v2029_v55, %v1586_v58  ;;  %v1587_v63 = vmul.f32 %v2028_v53, %v1543_v39  ;;  %v2176_v36 = vpop.f32.mrb[34].mxu0  ;;  %v1853_v39 = vmul.f32 %v2044_v25, %v1827_v35 }
 0x296   : > { %v1604_v0 = vadd.f32 %v2029_v55, %v1589_v61  ;;  %v1611_v2 = vmax.f32 %v1603_v60, 0.0  ;;  %v1830_v19 = vpop.f32.mrb[35].mxu0 }
 0x297   : > { %v1602_v1 = vadd.f32 %v2029_v55, %v1587_v63  ;;  %v1609_v4 = vmax.f32 %v1601_v62, 0.0 }
 0x298   : > { %v1612_v3 = vmax.f32 %v1604_v0, 0.0 }
 0x299   : > { %v1610_v5 = vmax.f32 %v1602_v1, 0.0  ;;  %v2155_v6 = vpop.f32.mrb[8].mxu1 }
 0x29a   : > { %v1618_v7 = vpack.c.bf16 %v1612_v3, %v1611_v2  ;;  %v1592_v8 = vmul.f32 %v2155_v6, %v2028_v53  ;;  %v1556_v9 = vpop.f32.mrb[9].mxu1 }
 0x29b   : > { %v1617_v10 = vpack.c.bf16 %v1610_v5, %v1609_v4  ;;  %v1590_v11 = vmul.f32 %v2028_v53, %v1556_v9  ;;  %v2156_v12 = vpop.f32.mrb[10].mxu1  ;;  %v1870_v4 = vadd.f32 %v2045_v37, %v1855_v59  ;;  %v1856_v5 = vmul.f32 %v2176_v36, %v2044_v25 }
 0x29c   : > { %v1607_v13 = vadd.f32 %v2029_v55, %v1592_v8  ;;  %v1593_v14 = vmul.f32 %v2156_v12, %v2028_v53  ;;  %v1559_v15 = vpop.f32.mrb[11].mxu1  ;;  %v1868_v9 = vadd.f32 %v2045_v37, %v1853_v39 }
 0x29d   : > { %v1605_v16 = vadd.f32 %v2029_v55, %v1590_v11  ;;  %v1591_v17 = vmul.f32 %v2028_v53, %v1559_v15  ;;  %2159 = vmatprep.mubr.msk.bf16.mxu1 %vm927_vm2, %v1617_v10  ;;  %v1867_v53 = vadd.f32 %v2045_v37, %v1852_v40  ;;  %v1854_v10 = vmul.f32 %v2044_v25, %v1830_v19 }
 0x29e   : > { %v1608_v18 = vadd.f32 %v2029_v55, %v1593_v14  ;;  %2160 = vmatmul.mubr.msk.bf16.vlgmr.msra.gmra.mrb[12].mxu1 %vm927_vm2, %v1618_v7  ;;  %v1615_v22 = vmax.f32 %v1607_v13, 0.0 }
 0x29f   : > { %v1606_v20 = vadd.f32 %v2029_v55, %v1591_v17  ;;  %v1613_v24 = vmax.f32 %v1605_v16, 0.0 }
 0x2a0   : > { %v1616_v23 = vmax.f32 %v1608_v18, 0.0  ;;  %v1871_v18 = vadd.f32 %v2045_v37, %v1856_v5 }
 0x2a1   : > { %v1614_v27 = vmax.f32 %v1606_v20, 0.0 }
 0x2a2   : > { %v1620_v28 = vpack.c.bf16 %v1616_v23, %v1615_v22  ;;  %v1869_v23 = vadd.f32 %v2045_v37, %v1854_v10 }
 0x2a3   : > { %v1619_v29 = vpack.c.bf16 %v1614_v27, %v1613_v24 }
 0x2a5   : > { %2163 = vmatprep.mubr.msk.bf16.mxu1 %vm927_vm2, %v1619_v29 }
 0x2a6   : > { %2164 = vmatmul.mubr.msk.bf16.gmra.mrb[16].mxu1 %vm927_vm2, %v1620_v28 }
 0x371   : > { %v2161_v41 = vpop.f32.mrb[12].mxu1 }
 0x372   : > { %v1712_v44 = vmul.f32 %v2161_v41, %v2034_v21  ;;  %v1672_v46 = vpop.f32.mrb[13].mxu1 }
 0x373   : > { %v1710_v48 = vmul.f32 %v2034_v21, %v1672_v46  ;;  %v2162_v49 = vpop.f32.mrb[14].mxu1 }
 0x374   : > { %v1727_v50 = vadd.f32 %v2035_v42, %v1712_v44  ;;  %v1713_v52 = vmul.f32 %v2162_v49, %v2034_v21  ;;  %v1675_v51 = vpop.f32.mrb[15].mxu1 }
 0x375   : > { %v1725_v54 = vadd.f32 %v2035_v42, %v1710_v48  ;;  %v1711_v55 = vmul.f32 %v2034_v21, %v1675_v51 }
 0x376   : > { %v1874_v56 = vadd.f32 %v1866_v43, %v1727_v50  ;;  %v1728_v58 = vadd.f32 %v2035_v42, %v1713_v52 }
 0x377   : > { %v1872_v60 = vadd.f32 %v1864_v47, %v1725_v54  ;;  %v1726_v61 = vadd.f32 %v2035_v42, %v1711_v55 }
 0x378   : > { %v1882_v62 = vmax.f32 %v1874_v56, 0.0  ;;  %v1875_v63 = vadd.f32 %v1867_v53, %v1728_v58 }
 0x379   : > { %v1880_v0 = vmax.f32 %v1872_v60, 0.0  ;;  %v1873_v1 = vadd.f32 %v1865_v57, %v1726_v61  ;;  %v2165_v2 = vpop.f32.mrb[16].mxu1 }
 0x37a   : > { %1891 = vst.msk [vmem:[%s2781_s28 + $0x10] sm:$0xff] %vm1888_vm7, %v1882_v62  ;;  %v1883_v3 = vmax.f32 %v1875_v63, 0.0  ;;  %v1716_v6 = vmul.f32 %v2165_v2, %v2034_v21  ;;  %v1688_v7 = vpop.f32.mrb[17].mxu1 }
 0x37b   : > { %1889 = vst.msk [vmem:[%s2781_s28] sm:$0xff] %vm1888_vm7, %v1880_v0  ;;  %v1881_v8 = vmax.f32 %v1873_v1, 0.0  ;;  %v1714_v11 = vmul.f32 %v2034_v21, %v1688_v7  ;;  %v2166_v12 = vpop.f32.mrb[18].mxu1 }
 0x37c   : > { %1892 = vst.msk [vmem:[%s2781_s28 + $0x18] sm:$0xff] %vm1888_vm7, %v1883_v3  ;;  %v1731_v13 = vadd.f32 %v2035_v42, %v1716_v6  ;;  %v1717_v14 = vmul.f32 %v2166_v12, %v2034_v21  ;;  %v1691_v15 = vpop.f32.mrb[19].mxu1 }
 0x37d   : > { %1890 = vst.msk [vmem:[%s2781_s28 + $0x8] sm:$0xff] %vm1888_vm7, %v1881_v8  ;;  %v1729_v16 = vadd.f32 %v2035_v42, %v1714_v11  ;;  %v1715_v17 = vmul.f32 %v2034_v21, %v1691_v15 }
 0x37e   : > { %v1878_v20 = vadd.f32 %v1870_v4, %v1731_v13  ;;  %v1732_v22 = vadd.f32 %v2035_v42, %v1717_v14 }
 0x37f   : > { %v1876_v24 = vadd.f32 %v1868_v9, %v1729_v16  ;;  %v1730_v27 = vadd.f32 %v2035_v42, %v1715_v17 }
 0x380   : > { %v1886_v28 = vmax.f32 %v1878_v20, 0.0  ;;  %v1879_v29 = vadd.f32 %v1871_v18, %v1732_v22 }
 0x381   : > { %v1884_v26 = vmax.f32 %v1876_v24, 0.0  ;;  %v1877_v31 = vadd.f32 %v1869_v23, %v1730_v27 }
 0x382   : > { %1895 = vst.msk [vmem:[%s2781_s28 + $0x30] sm:$0xff] %vm1888_vm7, %v1886_v28  ;;  %v1887_v32 = vmax.f32 %v1879_v29, 0.0 }
 0x383   : > { %1893 = vst.msk [vmem:[%s2781_s28 + $0x20] sm:$0xff] %vm1888_vm7, %v1884_v26  ;;  %v1885_v33 = vmax.f32 %v1877_v31, 0.0 }
 0x384   : > { %1896 = vst.msk [vmem:[%s2781_s28 + $0x38] sm:$0xff] %vm1888_vm7, %v1887_v32 }
 0x385   : > { %1894 = vst.msk [vmem:[%s2781_s28 + $0x28] sm:$0xff] %vm1888_vm7, %v1885_v33 }
 0x386 PF: > { %s24_s29 = sadd.s32 1, %s2362_s29  }
 0x387   : > { %p21_p4 = scmp.ge.s32.totalorder %s24_s29, 4  }
 0x389   :  { %23 = sbr.rel (!%p21_p4) target bundleno = 1 (0x1), region = 113 }

</bundles_post_ra>
